<compile_context>
chip_gen: v7x
topology: tpu7x:2x2x1
jax: 0.10.0
libtpu: 0.0.40
codegen_flags: <defaults>
</compile_context>

<pallas_src>
import functools
import math

import jax
import jax.numpy as jnp
from jax.experimental import pallas as pl
from jax.experimental.pallas import tpu as pltpu

VOXEL_SIZE = 0.04
INTERVAL = {"coarse": 4, "middle": 2, "fine": 1}


def _round_up(a, b):
    return ((a + b - 1) // b) * b


def _cdiv(a, b):
    return -(-a // b)


def _tpu_kind():
    try:
        d = jax.devices()[0]
        if d.platform != "tpu":
            return ""
        return d.device_kind.lower()
    except Exception:
        return ""


_KIND = _tpu_kind()
_IS_V7 = ("v7" in _KIND) or ("7x" in _KIND)
_IS_V6 = "v6" in _KIND

# Per-generation VMEM budget: v7x has only 64 MiB physical -> cap at 48 MiB;
# v4/v5e/v5p/v6e have 128 MiB -> 64 MiB; unknown chips stay conservative.
if _IS_V7:
    _VMEM_LIMIT = 48 * 1024 * 1024
elif _IS_V6 or ("v5" in _KIND) or ("v4" in _KIND):
    _VMEM_LIMIT = 64 * 1024 * 1024
else:
    _VMEM_LIMIT = 32 * 1024 * 1024

# bf16 key storage only where the VPU is bf16-native (v6e/v7x); f32 elsewhere.
# (Force jnp.float32 here for bit-closer validation against the PyTorch reference.)
_KEY_DTYPE = jnp.bfloat16 if (_IS_V6 or _IS_V7) else jnp.float32


# ---------------------------------------------------------------------------
# Pallas kernels
# ---------------------------------------------------------------------------
def _linear_rows_kernel(x_ref, w_ref, b_ref, o_ref):
    # x: [TR, Cin], w: [Cin, Cout], b: [1, Cout] -> o: [TR, Cout]
    acc = jnp.dot(x_ref[...], w_ref[...], preferred_element_type=jnp.float32)
    o_ref[...] = (acc + b_ref[...]).astype(o_ref.dtype)


def pallas_linear_rows(x, w, b, *, row_tile=4096, out_dtype=None):
    """y = x @ w + b   (the 1x1 Conv2d W_key applied to all B*N*H*W pixels at once)."""
    R, Cin = x.shape
    Cout = w.shape[1]
    out_dtype = out_dtype if out_dtype is not None else x.dtype
    if R <= row_tile:
        tr = max(8, _round_up(R, 8))
        if tr != R:                           # tiny pad, only when R is already small
            x = jnp.pad(x, ((0, tr - R), (0, 0)))
        Rp = tr
    else:
        tr = row_tile                         # ragged last block handled by the grid
        Rp = R
    out = pl.pallas_call(
        _linear_rows_kernel,
        out_shape=jax.ShapeDtypeStruct((Rp, Cout), out_dtype),
        grid_spec=pltpu.PrefetchScalarGridSpec(
            num_scalar_prefetch=0,
            grid=(_cdiv(Rp, tr),),
            in_specs=[
                pl.BlockSpec((tr, Cin), lambda i: (i, 0)),
                pl.BlockSpec((Cin, Cout), lambda i: (0, 0)),
                pl.BlockSpec((1, Cout), lambda i: (0, 0)),
            ],
            out_specs=pl.BlockSpec((tr, Cout), lambda i: (i, 0)),
        ),
        compiler_params=pltpu.CompilerParams(
            dimension_semantics=("parallel",),
            vmem_limit_bytes=_VMEM_LIMIT,
        ),
    )(x, w, b.reshape(1, Cout))
    return out[:R]


def _mv_attn_kernel(key_ref, vf_ref, vis_ref, wq_ref, bq_ref, o_ref, *, scale):
    # key: [N, D, TM]  bilinearly-sampled key features (voxels on the lane axis)
    # vf : [D, TM]     original voxel features (transposed)      -- residual + query in
    # vis: [N, TM]     1.0 where view n sees voxel m AND count_mask>1; else 0.0
    # wq : [D, D], bq: [D, 1]  W_query weights (resident, constant block index)
    # out: [D, TM]     vf + attention(y)
    key = key_ref[...].astype(jnp.float32)                        # [N, D, TM]
    vis = vis_ref[...]                                            # [N, TM]
    vf = vf_ref[...]                                              # [D, TM]

    # fused W_query:  q = Wq @ vf + bq      (lane-dense, one small MXU matmul)
    q = jnp.dot(wq_ref[...], vf, preferred_element_type=jnp.float32) + bq_ref[...]

    # per-view scores  q . key_n / sqrt(D)  (single broadcast mul + sublane reduce)
    scores = jnp.sum(key * q[None, :, :], axis=1) * scale         # [N, TM]
    scores = jnp.where(vis > 0.0, scores, -10000.0)

    m = jnp.max(scores, axis=0, keepdims=True)                    # [1, TM]
    e = jnp.exp(scores - m)
    denom = jnp.sum(e, axis=0, keepdims=True)
    probs = e * (1.0 / denom)                                     # softmax over views
    # NOTE: invisible views get prob exactly 0 (exp underflow at -1e4), so the keys
    # need not be zeroed; only the all-invisible / unselected case needs the gate.
    y = jnp.sum(probs[:, None, :] * key, axis=0)                  # [D, TM]
    any_vis = jnp.max(vis, axis=0, keepdims=True)                 # [1, TM]
    y = jnp.where(any_vis > 0.0, y, 0.0)

    o_ref[...] = (vf + y).astype(o_ref.dtype)                     # fused residual add


def pallas_mv_attention(key_t, vf_t, vis_t, wq, bq, *, m_tile):
    """key_t:[N,D,Mp], vf_t:[D,Mp], vis_t:[N,Mp], wq:[D,D], bq:[D,1] -> [D,Mp] (f32)."""
    N, D, Mp = key_t.shape
    kern = functools.partial(_mv_attn_kernel, scale=1.0 / math.sqrt(D))
    return pl.pallas_call(
        kern,
        out_shape=jax.ShapeDtypeStruct((D, Mp), jnp.float32),
        grid_spec=pltpu.PrefetchScalarGridSpec(
            num_scalar_prefetch=0,
            grid=(Mp // m_tile,),
            in_specs=[
                pl.BlockSpec((N, D, m_tile), lambda i: (0, 0, i)),
                pl.BlockSpec((D, m_tile), lambda i: (0, i)),
                pl.BlockSpec((N, m_tile), lambda i: (0, i)),
                pl.BlockSpec((D, D), lambda i: (0, 0)),
                pl.BlockSpec((D, 1), lambda i: (0, 0)),
            ],
            out_specs=pl.BlockSpec((D, m_tile), lambda i: (0, i)),
        ),
        compiler_params=pltpu.CompilerParams(
            dimension_semantics=("parallel",),
            vmem_limit_bytes=_VMEM_LIMIT,
        ),
    )(key_t, vf_t, vis_t, wq, bq)


def _pick_m_tile(n_views, d, key_bytes, max_tile=2048):
    """Largest voxel tile whose double-buffered streams + f32 temps fit the VMEM budget."""
    per_col = (2 * n_views * d * key_bytes      # double-buffered key stream
               + 4 * d * 4                      # vf in + out (double-buffered)
               + 2 * n_views * 4                # vis
               + 2 * n_views * d * 4)           # in-kernel f32 temporaries
    tm = (_VMEM_LIMIT // 2) // max(per_col, 1)
    return max(128, min(max_tile, (tm // 128) * 128))


# ---------------------------------------------------------------------------
# JAX glue: bilinear grid_sample (align_corners=True, zero padding); every voxel
# samples its own batch's key maps, so one pass over all voxels / views.
# ---------------------------------------------------------------------------
def _bilinear_gather(k_flat, gx, gy, batch_idx, N, H, W):
    # k_flat: [B*N*H*W, D]; gx, gy: [Mp, N]; batch_idx: [Mp] -> key: [Mp, N, D]
    x = (gx + 1.0) * 0.5 * (W - 1)
    y = (gy + 1.0) * 0.5 * (H - 1)
    x0 = jnp.floor(x)
    y0 = jnp.floor(y)
    base = (batch_idx[:, None] * N + jnp.arange(N, dtype=jnp.int32)[None, :]) * (H * W)

    def corner(xi, yi, wgt):
        inb = (xi >= 0) & (xi <= W - 1) & (yi >= 0) & (yi <= H - 1)
        xi_c = jnp.clip(xi, 0, W - 1).astype(jnp.int32)
        yi_c = jnp.clip(yi, 0, H - 1).astype(jnp.int32)
        idx = base + yi_c * W + xi_c                               # [Mp, N]
        vals = k_flat[idx]                                         # [Mp, N, D] row gather
        return jnp.where(inb[..., None], vals * wgt[..., None], 0.0)

    wx1 = x - x0
    wy1 = y - y0
    wx0 = 1.0 - wx1
    wy0 = 1.0 - wy1
    return (corner(x0, y0, wx0 * wy0) + corner(x0 + 1.0, y0, wx1 * wy0)
            + corner(x0, y0 + 1.0, wx0 * wy1) + corner(x0 + 1.0, y0 + 1.0, wx1 * wy1))


# ---------------------------------------------------------------------------
# Module parameters (deterministic init, PyTorch Linear/Conv2d shapes)
# ---------------------------------------------------------------------------
def init_params(key, backbone_dim, dim):
    k1, k2, k3, k4 = jax.random.split(key, 4)
    wq = jax.random.uniform(k1, (dim, dim), jnp.float32, -1.0, 1.0) / math.sqrt(dim)
    bq = jax.random.uniform(k2, (dim,), jnp.float32, -1.0, 1.0) / math.sqrt(dim)
    wk = jax.random.uniform(k3, (dim, backbone_dim), jnp.float32, -1.0, 1.0) / math.sqrt(backbone_dim)
    bk = jax.random.uniform(k4, (dim,), jnp.float32, -1.0, 1.0) / math.sqrt(backbone_dim)
    return {"wq": wq, "bq": bq, "wk": wk, "bk": bk}


# ---------------------------------------------------------------------------
# Forward pass
# ---------------------------------------------------------------------------
def multi_view_attention_forward(params, image_features, coords, voxel_features,
                                 projections, origins, count_mask, curr_scale="fine"):
    B, N, Cb, H, W = image_features.shape
    M, D = voxel_features.shape
    interval = float(INTERVAL[curr_scale])

    batch_idx = coords[:, 3].astype(jnp.int32)                                    # [M]
    sel = (count_mask > 1).astype(jnp.float32)                                    # [M]

    # ---- per-voxel world coords + projection with its OWN batch's matrices ----
    world = (coords[:, :3].astype(jnp.float32) * interval * VOXEL_SIZE
             + origins[batch_idx])                                                # [M,3]
    world_h = jnp.concatenate([world, jnp.ones((M, 1), jnp.float32)], axis=1)     # [M,4]
    proj_m = projections[batch_idx]                                               # [M,N,3,4]
    cam = jnp.einsum("mnij,mj->mni", proj_m, world_h)                             # [M,N,3]
    im_x, im_y, im_z = cam[..., 0], cam[..., 1], cam[..., 2]
    z_safe = jnp.where(jnp.abs(im_z) > 1e-6, im_z, 1e-6)                          # guard div-by-0
    u = im_x / z_safe
    v = im_y / z_safe
    gx = 2.0 * u / (W - 1) - 1.0
    gy = 2.0 * v / (H - 1) - 1.0
    vis = ((jnp.abs(gx) <= 1.0) & (jnp.abs(gy) <= 1.0)
           & (im_z > 0)).astype(jnp.float32)                                      # [M,N]
    vis = vis * sel[:, None]                                                      # fold count_mask>1

    # ---- tile selection (per-generation VMEM budget) + pad the SMALL arrays ----
    tm = _pick_m_tile(N, D, jnp.dtype(_KEY_DTYPE).itemsize)
    if _IS_V7 and M > 256:                       # give both TensorCores >=1 tile
        tm = min(tm, _round_up(_cdiv(M, 2), 128))
    steps = _cdiv(M, tm)
    tm = max(128, _round_up(_cdiv(M, steps), 128))    # rebalance -> minimal padding
    Mp = _round_up(M, tm)
    if Mp != M:
        pad = Mp - M
        gx = jnp.pad(gx, ((0, pad), (0, 0)))
        gy = jnp.pad(gy, ((0, pad), (0, 0)))
        vis = jnp.pad(vis, ((0, pad), (0, 0)))        # vis=0 -> padded voxels give y=0
        batch_idx = jnp.pad(batch_idx, ((0, pad),))
        vf = jnp.pad(voxel_features, ((0, pad), (0, 0)))
    else:
        vf = voxel_features

    # ---- W_key: 1x1 Conv2d as one Pallas matmul over all B*N*H*W pixels ----
    # cast to the key dtype BEFORE the channel-last transpose (halves that pass on v6e/v7x)
    x_cl = jnp.transpose(image_features.astype(_KEY_DTYPE),
                         (0, 1, 3, 4, 2)).reshape(B * N * H * W, Cb)
    k_flat = pallas_linear_rows(x_cl, params["wk"].T.astype(_KEY_DTYPE), params["bk"],
                                out_dtype=_KEY_DTYPE)                             # [B*N*H*W, D]

    # ---- F.grid_sample(bilinear, align_corners=True, zeros) — gather glue ----
    # TODO(synk): fuse this gather + the transpose below into the attention kernel
    #             (per-tile DMA row gathers, paged-attention pattern).
    key_s = _bilinear_gather(k_flat, gx, gy, batch_idx, N, H, W).astype(_KEY_DTYPE)  # [Mp,N,D]
    key_t = jnp.transpose(key_s, (1, 2, 0))                                       # [N,D,Mp]

    # ---- fused W_query + masked multi-view attention + residual (one launch) ----
    vf_t = vf.astype(jnp.float32).T                                               # [D,Mp]
    out_t = pallas_mv_attention(key_t, vf_t, jnp.transpose(vis, (1, 0)),
                                params["wq"], params["bq"].reshape(D, 1),
                                m_tile=tm)                                        # [D,Mp]
    feats_out = out_t[:, :M].T                                                    # [M,D]
    return coords, feats_out


# ---------------------------------------------------------------------------
if __name__ == "__main__":
    B, N, Cb, D, H, W, M = 2, 3, 8, 32, 16, 16, 64
    key = jax.random.PRNGKey(0)
    kp, kc, kf, ki, kcm, kn = jax.random.split(key, 6)

    params = init_params(kp, Cb, D)

    coords_xyz = jax.random.randint(kc, (M, 3), 0, 24).astype(jnp.int32)
    batch_col = jnp.concatenate([jnp.zeros((M // 2, 1), jnp.int32),
                                 jnp.ones((M - M // 2, 1), jnp.int32)], axis=0)
    coords = jnp.concatenate([coords_xyz, batch_col], axis=1)                     # [M,4]

    voxel_features = jax.random.normal(kf, (M, D), jnp.float32)
    image_features = jax.random.normal(ki, (B, N, Cb, H, W), jnp.float32)
    count_mask = jax.random.randint(kcm, (M,), 0, 4).astype(jnp.int32)

    # simple pinhole-like [3,4] projection matrices (positive depth, mostly visible)
    f, cx, cy = 18.0, (W - 1) / 2.0, (H - 1) / 2.0
    base = jnp.array([[f, 0.0, cx, 0.0],
                      [0.0, f, cy, 0.0],
                      [0.0, 0.0, 1.0, 2.0]], jnp.float32)
    projections = base[None, None] + 0.02 * jax.random.normal(kn, (B, N, 3, 4), jnp.float32)
    origins = jnp.zeros((B, 3), jnp.float32)

    fwd = jax.jit(multi_view_attention_forward, static_argnames=("curr_scale",))
    out_coords, out_feats = fwd(params, image_features, coords, voxel_features,
                                projections, origins, count_mask, curr_scale="fine")
    jax.block_until_ready(out_feats)
    assert out_feats.shape == (M, D)
    print("KERNEL_OK")
</pallas_src>

<mosaic_0001>
module attributes {stable_mosaic.version = 11 : i64} {
  func.func @_linear_rows_kernel(%arg0: i32, %arg1: memref<1536x8xf32, #tpu.memory_space<vmem>>, %arg2: memref<8x32xf32, #tpu.memory_space<vmem>>, %arg3: memref<1x32xf32, #tpu.memory_space<vmem>>, %arg4: memref<1536x32xf32, #tpu.memory_space<vmem>>) attributes {dimension_semantics = [#tpu.dimension_semantics<parallel>], iteration_bounds = array<i64: 1>, scalar_prefetch = 0 : i64, scratch_operands = 0 : i64, tpu.core_type = #tpu.core_type<tc>, window_params = [{transform_indices = @transform_0, window_bounds = array<i64: 1536, 8>}, {pipeline_mode = #tpu.pipeline_mode<synchronous>, transform_indices = @transform_1, window_bounds = array<i64: 8, 32>}, {pipeline_mode = #tpu.pipeline_mode<synchronous>, transform_indices = @transform_2, window_bounds = array<i64: 1, 32>}, {transform_indices = @transform_3, window_bounds = array<i64: 1536, 32>}]} {
    %c0 = arith.constant 0 : index
    %c0_0 = arith.constant 0 : index
    %0 = vector.load %arg1[%c0, %c0_0] : memref<1536x8xf32, #tpu.memory_space<vmem>>, vector<1536x8xf32>
    %c0_1 = arith.constant 0 : index
    %c0_2 = arith.constant 0 : index
    %1 = vector.load %arg2[%c0_1, %c0_2] : memref<8x32xf32, #tpu.memory_space<vmem>>, vector<8x32xf32>
    %cst = arith.constant dense<0.000000e+00> : vector<1536x32xf32>
    %2 = tpu.matmul %0, %1, %cst {dimension_numbers = #tpu.dot_dimension_numbers<[1], [0], [0], [1], [0, 0, 1, 1], [], []>} : vector<1536x8xf32>, vector<8x32xf32>, vector<1536x32xf32> -> vector<1536x32xf32>
    %c0_3 = arith.constant 0 : index
    %c0_4 = arith.constant 0 : index
    %3 = vector.load %arg3[%c0_3, %c0_4] : memref<1x32xf32, #tpu.memory_space<vmem>>, vector<1x32xf32>
    %4 = vector.broadcast %3 : vector<1x32xf32> to vector<1536x32xf32>
    %5 = arith.addf %2, %4 : vector<1536x32xf32>
    %c0_5 = arith.constant 0 : index
    %c0_6 = arith.constant 0 : index
    %6 = vector.load %arg4[%c0_5, %c0_6] : memref<1536x32xf32, #tpu.memory_space<vmem>>, vector<1536x32xf32>
    tpu.vector_store %arg4[%c0_5, %c0_6], %5 {strides = array<i32>} : memref<1536x32xf32, #tpu.memory_space<vmem>>, vector<1536x32xf32>,
    return
  }
  func.func @transform_0(%arg0: i32) -> (i32, i32) {
    %c0_i32 = arith.constant 0 : i32
    %c0_i32_0 = arith.constant 0 : i32
    return %arg0, %c0_i32 : i32, i32
  }
  func.func @transform_1(%arg0: i32) -> (i32, i32) {
    %c0_i32 = arith.constant 0 : i32
    %c0_i32_0 = arith.constant 0 : i32
    %c0_i32_1 = arith.constant 0 : i32
    return %c0_i32, %c0_i32_0 : i32, i32
  }
  func.func @transform_2(%arg0: i32) -> (i32, i32) {
    %c0_i32 = arith.constant 0 : i32
    %c0_i32_0 = arith.constant 0 : i32
    %c0_i32_1 = arith.constant 0 : i32
    return %c0_i32, %c0_i32_0 : i32, i32
  }
  func.func @transform_3(%arg0: i32) -> (i32, i32) {
    %c0_i32 = arith.constant 0 : i32
    %c0_i32_0 = arith.constant 0 : i32
    return %arg0, %c0_i32 : i32, i32
  }
}

module attributes {stable_mosaic.version = 11 : i64} {
  func.func @_mv_attn_kernel(%arg0: i32, %arg1: memref<3x32x128xf32, #tpu.memory_space<vmem>>, %arg2: memref<32x128xf32, #tpu.memory_space<vmem>>, %arg3: memref<3x128xf32, #tpu.memory_space<vmem>>, %arg4: memref<32x32xf32, #tpu.memory_space<vmem>>, %arg5: memref<32x1xf32, #tpu.memory_space<vmem>>, %arg6: memref<32x128xf32, #tpu.memory_space<vmem>>) attributes {dimension_semantics = [#tpu.dimension_semantics<parallel>], iteration_bounds = array<i64: 1>, scalar_prefetch = 0 : i64, scratch_operands = 0 : i64, tpu.core_type = #tpu.core_type<tc>, window_params = [{transform_indices = @transform_0, window_bounds = array<i64: 3, 32, 128>}, {transform_indices = @transform_1, window_bounds = array<i64: 32, 128>}, {transform_indices = @transform_2, window_bounds = array<i64: 3, 128>}, {pipeline_mode = #tpu.pipeline_mode<synchronous>, transform_indices = @transform_3, window_bounds = array<i64: 32, 32>}, {pipeline_mode = #tpu.pipeline_mode<synchronous>, transform_indices = @transform_4, window_bounds = array<i64: 32, 1>}, {transform_indices = @transform_5, window_bounds = array<i64: 32, 128>}]} {
    %c0 = arith.constant 0 : index
    %c0_0 = arith.constant 0 : index
    %c0_1 = arith.constant 0 : index
    %0 = vector.load %arg1[%c0, %c0_0, %c0_1] : memref<3x32x128xf32, #tpu.memory_space<vmem>>, vector<3x32x128xf32>
    %c0_2 = arith.constant 0 : index
    %c0_3 = arith.constant 0 : index
    %1 = vector.load %arg3[%c0_2, %c0_3] : memref<3x128xf32, #tpu.memory_space<vmem>>, vector<3x128xf32>
    %c0_4 = arith.constant 0 : index
    %c0_5 = arith.constant 0 : index
    %2 = vector.load %arg2[%c0_4, %c0_5] : memref<32x128xf32, #tpu.memory_space<vmem>>, vector<32x128xf32>
    %c0_6 = arith.constant 0 : index
    %c0_7 = arith.constant 0 : index
    %3 = vector.load %arg4[%c0_6, %c0_7] : memref<32x32xf32, #tpu.memory_space<vmem>>, vector<32x32xf32>
    %cst = arith.constant dense<0.000000e+00> : vector<32x128xf32>
    %4 = tpu.matmul %3, %2, %cst {dimension_numbers = #tpu.dot_dimension_numbers<[1], [0], [0], [1], [0, 0, 1, 1], [], []>} : vector<32x32xf32>, vector<32x128xf32>, vector<32x128xf32> -> vector<32x128xf32>
    %c0_8 = arith.constant 0 : index
    %c0_9 = arith.constant 0 : index
    %5 = vector.load %arg5[%c0_8, %c0_9] : memref<32x1xf32, #tpu.memory_space<vmem>>, vector<32x1xf32>
    %6 = vector.broadcast %5 : vector<32x1xf32> to vector<32x128xf32>
    %7 = arith.addf %4, %6 : vector<32x128xf32>
    %8 = vector.shape_cast %7 : vector<32x128xf32> to vector<1x32x128xf32>
    %9 = vector.broadcast %8 : vector<1x32x128xf32> to vector<3x32x128xf32>
    %10 = arith.mulf %0, %9 : vector<3x32x128xf32>
    %cst_10 = arith.constant dense<0.000000e+00> : vector<3x128xf32>
    %11 = vector.multi_reduction <add>, %10, %cst_10 [1] : vector<3x32x128xf32> to vector<3x128xf32>
    %cst_11 = arith.constant 0.176776692 : f32
    %12 = vector.broadcast %cst_11 : f32 to vector<3x128xf32>
    %13 = arith.mulf %11, %12 : vector<3x128xf32>
    %cst_12 = arith.constant 0.000000e+00 : f32
    %14 = vector.broadcast %cst_12 : f32 to vector<3x128xf32>
    %15 = arith.cmpf ogt, %1, %14 : vector<3x128xf32>
    %cst_13 = arith.constant -1.000000e+04 : f32
    %16 = vector.broadcast %cst_13 : f32 to vector<3x128xf32>
    %17 = arith.select %15, %13, %16 : vector<3x128xi1>, vector<3x128xf32>
    %cst_14 = arith.constant dense<0xFF800000> : vector<128xf32>
    %18 = vector.multi_reduction <maximumf>, %17, %cst_14 [0] : vector<3x128xf32> to vector<128xf32>
    %19 = vector.shape_cast %18 : vector<128xf32> to vector<1x128xf32>
    %20 = vector.broadcast %19 : vector<1x128xf32> to vector<3x128xf32>
    %21 = arith.subf %17, %20 : vector<3x128xf32>
    %22 = math.exp %21 : vector<3x128xf32>
    %cst_15 = arith.constant dense<0.000000e+00> : vector<128xf32>
    %23 = vector.multi_reduction <add>, %22, %cst_15 [0] : vector<3x128xf32> to vector<128xf32>
    %24 = vector.shape_cast %23 : vector<128xf32> to vector<1x128xf32>
    %cst_16 = arith.constant 1.000000e+00 : f32
    %25 = vector.broadcast %cst_16 : f32 to vector<1x128xf32>
    %26 = arith.divf %25, %24 : vector<1x128xf32>
    %27 = vector.broadcast %26 : vector<1x128xf32> to vector<3x128xf32>
    %28 = arith.mulf %22, %27 : vector<3x128xf32>
    %29 = vector.shape_cast %28 : vector<3x128xf32> to vector<3x1x128xf32>
    %30 = vector.broadcast %29 : vector<3x1x128xf32> to vector<3x32x128xf32>
    %31 = arith.mulf %30, %0 : vector<3x32x128xf32>
    %cst_17 = arith.constant dense<0.000000e+00> : vector<32x128xf32>
    %32 = vector.multi_reduction <add>, %31, %cst_17 [0] : vector<3x32x128xf32> to vector<32x128xf32>
    %cst_18 = arith.constant dense<0xFF800000> : vector<128xf32>
    %33 = vector.multi_reduction <maximumf>, %1, %cst_18 [0] : vector<3x128xf32> to vector<128xf32>
    %34 = vector.shape_cast %33 : vector<128xf32> to vector<1x128xf32>
    %cst_19 = arith.constant 0.000000e+00 : f32
    %35 = vector.broadcast %cst_19 : f32 to vector<1x128xf32>
    %36 = arith.cmpf ogt, %34, %35 : vector<1x128xf32>
    %cst_20 = arith.constant 0.000000e+00 : f32
    %37 = vector.shape_cast %36 : vector<1x128xi1> to vector<1x128xi1>
    %38 = vector.broadcast %37 : vector<1x128xi1> to vector<32x128xi1>
    %39 = vector.broadcast %cst_20 : f32 to vector<32x128xf32>
    %40 = arith.select %38, %32, %39 : vector<32x128xi1>, vector<32x128xf32>
    %41 = arith.addf %2, %40 : vector<32x128xf32>
    %c0_21 = arith.constant 0 : index
    %c0_22 = arith.constant 0 : index
    %42 = vector.load %arg6[%c0_21, %c0_22] : memref<32x128xf32, #tpu.memory_space<vmem>>, vector<32x128xf32>
    tpu.vector_store %arg6[%c0_21, %c0_22], %41 {strides = array<i32>} : memref<32x128xf32, #tpu.memory_space<vmem>>, vector<32x128xf32>,
    return
  }
  func.func @transform_0(%arg0: i32) -> (i32, i32, i32) {
    %c0_i32 = arith.constant 0 : i32
    %c0_i32_0 = arith.constant 0 : i32
    %c0_i32_1 = arith.constant 0 : i32
    return %c0_i32, %c0_i32_0, %arg0 : i32, i32, i32
  }
  func.func @transform_1(%arg0: i32) -> (i32, i32) {
    %c0_i32 = arith.constant 0 : i32
    %c0_i32_0 = arith.constant 0 : i32
    return %c0_i32, %arg0 : i32, i32
  }
  func.func @transform_2(%arg0: i32) -> (i32, i32) {
    %c0_i32 = arith.constant 0 : i32
    %c0_i32_0 = arith.constant 0 : i32
    return %c0_i32, %arg0 : i32, i32
  }
  func.func @transform_3(%arg0: i32) -> (i32, i32) {
    %c0_i32 = arith.constant 0 : i32
    %c0_i32_0 = arith.constant 0 : i32
    %c0_i32_1 = arith.constant 0 : i32
    return %c0_i32, %c0_i32_0 : i32, i32
  }
  func.func @transform_4(%arg0: i32) -> (i32, i32) {
    %c0_i32 = arith.constant 0 : i32
    %c0_i32_0 = arith.constant 0 : i32
    %c0_i32_1 = arith.constant 0 : i32
    return %c0_i32, %c0_i32_0 : i32, i32
  }
  func.func @transform_5(%arg0: i32) -> (i32, i32) {
    %c0_i32 = arith.constant 0 : i32
    %c0_i32_0 = arith.constant 0 : i32
    return %c0_i32, %arg0 : i32, i32
  }
}

</mosaic_0001>

<bundles_post_ra>
// kernel: multi_view_attention_forward.2
= control target key start
LH: loop header
LB: loop body
LE: loop exit
PB: predicated region body
PF: predicated region fallthrough
CT: control target
= control target key end

     0   :  { %vm214_vm0 = vcmask 64512   ;;  %vm1816_vm1 = vcmask 261120   ;;  %s4429_s1 = inlined_call_operand.vmem [shape: f32[8,32], index: 1, kind: input, shape index: {}]   ;;  %s4430_s0 = inlined_call_operand.vmem [shape: f32[1536,8], index: 0, kind: input, shape index: {}]   ;;  %s4431_s2 = inlined_call_operand.vmem [shape: f32[1,32], index: 2, kind: input, shape index: {}]   ;;  %s4432_s3 = inlined_call_operand.vmem [shape: f32[1536,32], index: 3, kind: output, shape index: {}]  }
   0x1   :  { %v206_v0 = vld [vmem:[%s4429_s1] sm:$0xff]  ;;  %v15_v3 = vld [vmem:[%s4430_s0 + $0x8] sm:$0xff]  ;;  %v16_v5 = vld [vmem:[%s4430_s0 + $0x10] sm:$0xff] }
   0x2   :  { %v14_v1 = vld [vmem:[%s4430_s0] sm:$0xff]  ;;  %2399 = vmatprep.subr.mxu0 %v206_v0  ;;  %2689 = vmatprep.subr.mxu1 %v206_v0  ;;  %v111_v4 = vld [vmem:[%s4430_s0 + $0x308] sm:$0xff]  ;;  %v112_v6 = vld [vmem:[%s4430_s0 + $0x310] sm:$0xff] }
   0x3   :  { %v110_v2 = vld [vmem:[%s4430_s0 + $0x300] sm:$0xff]  ;;  %2400 = vmatpush3.msra.mxu0 %v206_v0  ;;  %2690 = vmatpush3.msra.mxu1 %v206_v0  ;;  %v17_v7 = vld [vmem:[%s4430_s0 + $0x18] sm:$0xff]  ;;  %v19_v11 = vld [vmem:[%s4430_s0 + $0x28] sm:$0xff] }
   0x4   :  { %2401 = vmatprep.mubr.msk.f32.mxu0 %vm214_vm0, %v14_v1  ;;  %2545 = vmatprep.mubr.msk.f32.mxu1 %vm214_vm0, %v110_v2  ;;  %v113_v8 = vld [vmem:[%s4430_s0 + $0x318] sm:$0xff]  ;;  %v18_v9 = vld [vmem:[%s4430_s0 + $0x20] sm:$0xff]  ;;  %v115_v12 = vld [vmem:[%s4430_s0 + $0x328] sm:$0xff] }
   0x5   :  { %2402 = vmatmul.mubr.msk.f32.vlgmr.msra.gmra.mrb[0].mxu0 %vm214_vm0, %v15_v3  ;;  %2546 = vmatmul.mubr.msk.f32.vlgmr.msra.gmra.mrb[0].mxu1 %vm214_vm0, %v111_v4  ;;  %v114_v10 = vld [vmem:[%s4430_s0 + $0x320] sm:$0xff]  ;;  %v20_v13 = vld [vmem:[%s4430_s0 + $0x30] sm:$0xff]  ;;  %v21_v15 = vld [vmem:[%s4430_s0 + $0x38] sm:$0xff] }
   0x6   :  { %2404 = vmatprep.mubr.msk.f32.mxu0 %vm214_vm0, %v16_v5  ;;  %2548 = vmatprep.mubr.msk.f32.mxu1 %vm214_vm0, %v112_v6  ;;  %v116_v14 = vld [vmem:[%s4430_s0 + $0x330] sm:$0xff]  ;;  %v117_v16 = vld [vmem:[%s4430_s0 + $0x338] sm:$0xff]  ;;  %v22_v17 = vld [vmem:[%s4430_s0 + $0x40] sm:$0xff] }
   0x7   :  { %v118_v18 = vld [vmem:[%s4430_s0 + $0x340] sm:$0xff]  ;;  %v23_v19 = vld [vmem:[%s4430_s0 + $0x48] sm:$0xff]  ;;  %v24_v21 = vld [vmem:[%s4430_s0 + $0x50] sm:$0xff] }
   0x8   :  { %v119_v20 = vld [vmem:[%s4430_s0 + $0x348] sm:$0xff]  ;;  %v120_v22 = vld [vmem:[%s4430_s0 + $0x350] sm:$0xff]  ;;  %v25_v23 = vld [vmem:[%s4430_s0 + $0x58] sm:$0xff] }
   0x9   :  { %2405 = vmatmul.mubr.msk.f32.gmra.mrb[2].mxu0 %vm214_vm0, %v17_v7  ;;  %2549 = vmatmul.mubr.msk.f32.gmra.mrb[2].mxu1 %vm214_vm0, %v113_v8  ;;  %v121_v24 = vld [vmem:[%s4430_s0 + $0x358] sm:$0xff]  ;;  %v26_v25 = vld [vmem:[%s4430_s0 + $0x60] sm:$0xff]  ;;  %v27_v27 = vld [vmem:[%s4430_s0 + $0x68] sm:$0xff] }
   0xa   :  { %2407 = vmatprep.mubr.msk.f32.mxu0 %vm214_vm0, %v18_v9  ;;  %2551 = vmatprep.mubr.msk.f32.mxu1 %vm214_vm0, %v114_v10  ;;  %v122_v26 = vld [vmem:[%s4430_s0 + $0x360] sm:$0xff]  ;;  %v123_v28 = vld [vmem:[%s4430_s0 + $0x368] sm:$0xff]  ;;  %v28_v29 = vld [vmem:[%s4430_s0 + $0x70] sm:$0xff] }
   0xb   :  { %v124_v30 = vld [vmem:[%s4430_s0 + $0x370] sm:$0xff]  ;;  %v29_v31 = vld [vmem:[%s4430_s0 + $0x78] sm:$0xff]  ;;  %v30_v33 = vld [vmem:[%s4430_s0 + $0x80] sm:$0xff] }
   0xc   :  { %v125_v32 = vld [vmem:[%s4430_s0 + $0x378] sm:$0xff]  ;;  %v126_v34 = vld [vmem:[%s4430_s0 + $0x380] sm:$0xff]  ;;  %v31_v35 = vld [vmem:[%s4430_s0 + $0x88] sm:$0xff] }
   0xd   :  { %2408 = vmatmul.mubr.msk.f32.gmra.mrb[4].mxu0 %vm214_vm0, %v19_v11  ;;  %2552 = vmatmul.mubr.msk.f32.gmra.mrb[4].mxu1 %vm214_vm0, %v115_v12  ;;  %v127_v36 = vld [vmem:[%s4430_s0 + $0x388] sm:$0xff]  ;;  %v32_v37 = vld [vmem:[%s4430_s0 + $0x90] sm:$0xff]  ;;  %v33_v39 = vld [vmem:[%s4430_s0 + $0x98] sm:$0xff] }
   0xe   :  { %2410 = vmatprep.mubr.msk.f32.mxu0 %vm214_vm0, %v20_v13  ;;  %2554 = vmatprep.mubr.msk.f32.mxu1 %vm214_vm0, %v116_v14  ;;  %v128_v38 = vld [vmem:[%s4430_s0 + $0x390] sm:$0xff]  ;;  %v129_v40 = vld [vmem:[%s4430_s0 + $0x398] sm:$0xff]  ;;  %v34_v41 = vld [vmem:[%s4430_s0 + $0xa0] sm:$0xff] }
   0xf   :  { %v130_v42 = vld [vmem:[%s4430_s0 + $0x3a0] sm:$0xff]  ;;  %v35_v43 = vld [vmem:[%s4430_s0 + $0xa8] sm:$0xff]  ;;  %v36_v45 = vld [vmem:[%s4430_s0 + $0xb0] sm:$0xff] }
  0x10   :  { %v131_v44 = vld [vmem:[%s4430_s0 + $0x3a8] sm:$0xff]  ;;  %v132_v46 = vld [vmem:[%s4430_s0 + $0x3b0] sm:$0xff]  ;;  %v37_v47 = vld [vmem:[%s4430_s0 + $0xb8] sm:$0xff] }
  0x11   :  { %2411 = vmatmul.mubr.msk.f32.gmra.mrb[6].mxu0 %vm214_vm0, %v21_v15  ;;  %2555 = vmatmul.mubr.msk.f32.gmra.mrb[6].mxu1 %vm214_vm0, %v117_v16  ;;  %v133_v48 = vld [vmem:[%s4430_s0 + $0x3b8] sm:$0xff]  ;;  %v38_v49 = vld [vmem:[%s4430_s0 + $0xc0] sm:$0xff]  ;;  %v39_v51 = vld [vmem:[%s4430_s0 + $0xc8] sm:$0xff] }
  0x12   :  { %2413 = vmatprep.mubr.msk.f32.mxu0 %vm214_vm0, %v22_v17  ;;  %2557 = vmatprep.mubr.msk.f32.mxu1 %vm214_vm0, %v118_v18  ;;  %v134_v50 = vld [vmem:[%s4430_s0 + $0x3c0] sm:$0xff]  ;;  %v135_v52 = vld [vmem:[%s4430_s0 + $0x3c8] sm:$0xff]  ;;  %v40_v53 = vld [vmem:[%s4430_s0 + $0xd0] sm:$0xff] }
  0x13   :  { %v136_v54 = vld [vmem:[%s4430_s0 + $0x3d0] sm:$0xff]  ;;  %v41_v55 = vld [vmem:[%s4430_s0 + $0xd8] sm:$0xff]  ;;  %v42_v57 = vld [vmem:[%s4430_s0 + $0xe0] sm:$0xff] }
  0x14   :  { %v137_v56 = vld [vmem:[%s4430_s0 + $0x3d8] sm:$0xff]  ;;  %v138_v58 = vld [vmem:[%s4430_s0 + $0x3e0] sm:$0xff]  ;;  %v43_v59 = vld [vmem:[%s4430_s0 + $0xe8] sm:$0xff] }
  0x15   :  { %2414 = vmatmul.mubr.msk.f32.gmra.mrb[8].mxu0 %vm214_vm0, %v23_v19  ;;  %2558 = vmatmul.mubr.msk.f32.gmra.mrb[8].mxu1 %vm214_vm0, %v119_v20  ;;  %v139_v60 = vld [vmem:[%s4430_s0 + $0x3e8] sm:$0xff]  ;;  %v44_v61 = vld [vmem:[%s4430_s0 + $0xf0] sm:$0xff]  ;;  %v45_v63 = vld [vmem:[%s4430_s0 + $0xf8] sm:$0xff] }
  0x16   :  { %2416 = vmatprep.mubr.msk.f32.mxu0 %vm214_vm0, %v24_v21  ;;  %2560 = vmatprep.mubr.msk.f32.mxu1 %vm214_vm0, %v120_v22  ;;  %v140_v62 = vld [vmem:[%s4430_s0 + $0x3f0] sm:$0xff]  ;;  %v141_v0 = vld [vmem:[%s4430_s0 + $0x3f8] sm:$0xff]  ;;  %v46_v1 = vld [vmem:[%s4430_s0 + $0x100] sm:$0xff] }
  0x17   :  { %v142_v2 = vld [vmem:[%s4430_s0 + $0x400] sm:$0xff]  ;;  %v47_v3 = vld [vmem:[%s4430_s0 + $0x108] sm:$0xff]  ;;  %v48_v5 = vld [vmem:[%s4430_s0 + $0x110] sm:$0xff] }
  0x18   :  { %v143_v4 = vld [vmem:[%s4430_s0 + $0x408] sm:$0xff]  ;;  %v144_v6 = vld [vmem:[%s4430_s0 + $0x410] sm:$0xff]  ;;  %v49_v7 = vld [vmem:[%s4430_s0 + $0x118] sm:$0xff] }
  0x19   :  { %2417 = vmatmul.mubr.msk.f32.gmra.mrb[10].mxu0 %vm214_vm0, %v25_v23  ;;  %2561 = vmatmul.mubr.msk.f32.gmra.mrb[10].mxu1 %vm214_vm0, %v121_v24  ;;  %v145_v8 = vld [vmem:[%s4430_s0 + $0x418] sm:$0xff]  ;;  %v50_v9 = vld [vmem:[%s4430_s0 + $0x120] sm:$0xff]  ;;  %v51_v11 = vld [vmem:[%s4430_s0 + $0x128] sm:$0xff] }
  0x1a   :  { %2419 = vmatprep.mubr.msk.f32.mxu0 %vm214_vm0, %v26_v25  ;;  %2563 = vmatprep.mubr.msk.f32.mxu1 %vm214_vm0, %v122_v26  ;;  %v146_v10 = vld [vmem:[%s4430_s0 + $0x420] sm:$0xff]  ;;  %v147_v12 = vld [vmem:[%s4430_s0 + $0x428] sm:$0xff]  ;;  %v52_v13 = vld [vmem:[%s4430_s0 + $0x130] sm:$0xff] }
  0x1b   :  { %v148_v14 = vld [vmem:[%s4430_s0 + $0x430] sm:$0xff]  ;;  %v53_v15 = vld [vmem:[%s4430_s0 + $0x138] sm:$0xff]  ;;  %v54_v17 = vld [vmem:[%s4430_s0 + $0x140] sm:$0xff] }
  0x1c   :  { %v149_v16 = vld [vmem:[%s4430_s0 + $0x438] sm:$0xff]  ;;  %v150_v18 = vld [vmem:[%s4430_s0 + $0x440] sm:$0xff]  ;;  %v55_v19 = vld [vmem:[%s4430_s0 + $0x148] sm:$0xff] }
  0x1d   :  { %2420 = vmatmul.mubr.msk.f32.gmra.mrb[12].mxu0 %vm214_vm0, %v27_v27  ;;  %2564 = vmatmul.mubr.msk.f32.gmra.mrb[12].mxu1 %vm214_vm0, %v123_v28  ;;  %v151_v20 = vld [vmem:[%s4430_s0 + $0x448] sm:$0xff]  ;;  %v56_v21 = vld [vmem:[%s4430_s0 + $0x150] sm:$0xff]  ;;  %v57_v23 = vld [vmem:[%s4430_s0 + $0x158] sm:$0xff] }
  0x1e   :  { %2422 = vmatprep.mubr.msk.f32.mxu0 %vm214_vm0, %v28_v29  ;;  %2566 = vmatprep.mubr.msk.f32.mxu1 %vm214_vm0, %v124_v30  ;;  %v152_v22 = vld [vmem:[%s4430_s0 + $0x450] sm:$0xff]  ;;  %v153_v24 = vld [vmem:[%s4430_s0 + $0x458] sm:$0xff]  ;;  %v58_v25 = vld [vmem:[%s4430_s0 + $0x160] sm:$0xff] }
  0x1f   :  { %v154_v26 = vld [vmem:[%s4430_s0 + $0x460] sm:$0xff]  ;;  %v59_v27 = vld [vmem:[%s4430_s0 + $0x168] sm:$0xff]  ;;  %v60_v29 = vld [vmem:[%s4430_s0 + $0x170] sm:$0xff] }
  0x20   :  { %v155_v28 = vld [vmem:[%s4430_s0 + $0x468] sm:$0xff]  ;;  %v156_v30 = vld [vmem:[%s4430_s0 + $0x470] sm:$0xff] }
  0x21   :  { %2423 = vmatmul.mubr.msk.f32.gmra.mrb[14].mxu0 %vm214_vm0, %v29_v31  ;;  %2567 = vmatmul.mubr.msk.f32.gmra.mrb[14].mxu1 %vm214_vm0, %v125_v32  ;;  %v61_v31 = vld [vmem:[%s4430_s0 + $0x178] sm:$0xff] }
  0x22   :  { %2425 = vmatprep.mubr.msk.f32.mxu0 %vm214_vm0, %v30_v33  ;;  %2569 = vmatprep.mubr.msk.f32.mxu1 %vm214_vm0, %v126_v34  ;;  %v157_v32 = vld [vmem:[%s4430_s0 + $0x478] sm:$0xff]  ;;  %v62_v33 = vld [vmem:[%s4430_s0 + $0x180] sm:$0xff] }
  0x23   :  { %v158_v34 = vld [vmem:[%s4430_s0 + $0x480] sm:$0xff] }
  0x25   :  { %2426 = vmatmul.mubr.msk.f32.gmra.mrb[16].mxu0 %vm214_vm0, %v31_v35  ;;  %2570 = vmatmul.mubr.msk.f32.gmra.mrb[16].mxu1 %vm214_vm0, %v127_v36  ;;  %v63_v35 = vld [vmem:[%s4430_s0 + $0x188] sm:$0xff] }
  0x26   :  { %2428 = vmatprep.mubr.msk.f32.mxu0 %vm214_vm0, %v32_v37  ;;  %2572 = vmatprep.mubr.msk.f32.mxu1 %vm214_vm0, %v128_v38  ;;  %v159_v36 = vld [vmem:[%s4430_s0 + $0x488] sm:$0xff]  ;;  %v64_v37 = vld [vmem:[%s4430_s0 + $0x190] sm:$0xff] }
  0x27   :  { %v160_v38 = vld [vmem:[%s4430_s0 + $0x490] sm:$0xff] }
  0x29   :  { %2429 = vmatmul.mubr.msk.f32.gmra.mrb[18].mxu0 %vm214_vm0, %v33_v39  ;;  %2573 = vmatmul.mubr.msk.f32.gmra.mrb[18].mxu1 %vm214_vm0, %v129_v40  ;;  %v65_v39 = vld [vmem:[%s4430_s0 + $0x198] sm:$0xff] }
  0x2a   :  { %2431 = vmatprep.mubr.msk.f32.mxu0 %vm214_vm0, %v34_v41  ;;  %2575 = vmatprep.mubr.msk.f32.mxu1 %vm214_vm0, %v130_v42  ;;  %v161_v40 = vld [vmem:[%s4430_s0 + $0x498] sm:$0xff]  ;;  %v66_v41 = vld [vmem:[%s4430_s0 + $0x1a0] sm:$0xff] }
  0x2b   :  { %v162_v42 = vld [vmem:[%s4430_s0 + $0x4a0] sm:$0xff] }
  0x2d   :  { %2432 = vmatmul.mubr.msk.f32.gmra.mrb[20].mxu0 %vm214_vm0, %v35_v43  ;;  %2576 = vmatmul.mubr.msk.f32.gmra.mrb[20].mxu1 %vm214_vm0, %v131_v44  ;;  %v67_v43 = vld [vmem:[%s4430_s0 + $0x1a8] sm:$0xff] }
  0x2e   :  { %2434 = vmatprep.mubr.msk.f32.mxu0 %vm214_vm0, %v36_v45  ;;  %2578 = vmatprep.mubr.msk.f32.mxu1 %vm214_vm0, %v132_v46  ;;  %v163_v44 = vld [vmem:[%s4430_s0 + $0x4a8] sm:$0xff]  ;;  %v68_v45 = vld [vmem:[%s4430_s0 + $0x1b0] sm:$0xff] }
  0x2f   :  { %v164_v46 = vld [vmem:[%s4430_s0 + $0x4b0] sm:$0xff] }
  0x31   :  { %2435 = vmatmul.mubr.msk.f32.gmra.mrb[22].mxu0 %vm214_vm0, %v37_v47  ;;  %2579 = vmatmul.mubr.msk.f32.gmra.mrb[22].mxu1 %vm214_vm0, %v133_v48  ;;  %v69_v47 = vld [vmem:[%s4430_s0 + $0x1b8] sm:$0xff] }
  0x32   :  { %2437 = vmatprep.mubr.msk.f32.mxu0 %vm214_vm0, %v38_v49  ;;  %2581 = vmatprep.mubr.msk.f32.mxu1 %vm214_vm0, %v134_v50  ;;  %v165_v48 = vld [vmem:[%s4430_s0 + $0x4b8] sm:$0xff]  ;;  %v70_v49 = vld [vmem:[%s4430_s0 + $0x1c0] sm:$0xff] }
  0x33   :  { %v166_v50 = vld [vmem:[%s4430_s0 + $0x4c0] sm:$0xff] }
  0x35   :  { %2438 = vmatmul.mubr.msk.f32.gmra.mrb[24].mxu0 %vm214_vm0, %v39_v51  ;;  %2582 = vmatmul.mubr.msk.f32.gmra.mrb[24].mxu1 %vm214_vm0, %v135_v52  ;;  %v71_v51 = vld [vmem:[%s4430_s0 + $0x1c8] sm:$0xff] }
  0x36   :  { %2440 = vmatprep.mubr.msk.f32.mxu0 %vm214_vm0, %v40_v53  ;;  %2584 = vmatprep.mubr.msk.f32.mxu1 %vm214_vm0, %v136_v54  ;;  %v167_v52 = vld [vmem:[%s4430_s0 + $0x4c8] sm:$0xff]  ;;  %v72_v53 = vld [vmem:[%s4430_s0 + $0x1d0] sm:$0xff] }
  0x37   :  { %v168_v54 = vld [vmem:[%s4430_s0 + $0x4d0] sm:$0xff] }
  0x39   :  { %2441 = vmatmul.mubr.msk.f32.gmra.mrb[26].mxu0 %vm214_vm0, %v41_v55  ;;  %2585 = vmatmul.mubr.msk.f32.gmra.mrb[26].mxu1 %vm214_vm0, %v137_v56  ;;  %v73_v55 = vld [vmem:[%s4430_s0 + $0x1d8] sm:$0xff] }
  0x3a   :  { %2443 = vmatprep.mubr.msk.f32.mxu0 %vm214_vm0, %v42_v57  ;;  %2587 = vmatprep.mubr.msk.f32.mxu1 %vm214_vm0, %v138_v58  ;;  %v169_v56 = vld [vmem:[%s4430_s0 + $0x4d8] sm:$0xff]  ;;  %v74_v57 = vld [vmem:[%s4430_s0 + $0x1e0] sm:$0xff] }
  0x3b   :  { %v170_v58 = vld [vmem:[%s4430_s0 + $0x4e0] sm:$0xff] }
  0x3d   :  { %2444 = vmatmul.mubr.msk.f32.gmra.mrb[28].mxu0 %vm214_vm0, %v43_v59  ;;  %2588 = vmatmul.mubr.msk.f32.gmra.mrb[28].mxu1 %vm214_vm0, %v139_v60  ;;  %v75_v59 = vld [vmem:[%s4430_s0 + $0x1e8] sm:$0xff] }
  0x3e   :  { %2446 = vmatprep.mubr.msk.f32.mxu0 %vm214_vm0, %v44_v61  ;;  %2590 = vmatprep.mubr.msk.f32.mxu1 %vm214_vm0, %v140_v62  ;;  %v171_v60 = vld [vmem:[%s4430_s0 + $0x4e8] sm:$0xff]  ;;  %v76_v61 = vld [vmem:[%s4430_s0 + $0x1f0] sm:$0xff] }
  0x3f   :  { %v172_v62 = vld [vmem:[%s4430_s0 + $0x4f0] sm:$0xff] }
  0x41   :  { %2447 = vmatmul.mubr.msk.f32.gmra.mrb[30].mxu0 %vm214_vm0, %v45_v63  ;;  %2591 = vmatmul.mubr.msk.f32.gmra.mrb[30].mxu1 %vm214_vm0, %v141_v0  ;;  %v77_v63 = vld [vmem:[%s4430_s0 + $0x1f8] sm:$0xff] }
  0x42   :  { %2449 = vmatprep.mubr.msk.f32.mxu0 %vm214_vm0, %v46_v1  ;;  %2593 = vmatprep.mubr.msk.f32.mxu1 %vm214_vm0, %v142_v2  ;;  %v173_v0 = vld [vmem:[%s4430_s0 + $0x4f8] sm:$0xff]  ;;  %v78_v1 = vld [vmem:[%s4430_s0 + $0x200] sm:$0xff] }
  0x43   :  { %v174_v2 = vld [vmem:[%s4430_s0 + $0x500] sm:$0xff] }
  0x45   :  { %2450 = vmatmul.mubr.msk.f32.gmra.mrb[32].mxu0 %vm214_vm0, %v47_v3  ;;  %2594 = vmatmul.mubr.msk.f32.gmra.mrb[32].mxu1 %vm214_vm0, %v143_v4  ;;  %v79_v3 = vld [vmem:[%s4430_s0 + $0x208] sm:$0xff] }
  0x46   :  { %2452 = vmatprep.mubr.msk.f32.mxu0 %vm214_vm0, %v48_v5  ;;  %2596 = vmatprep.mubr.msk.f32.mxu1 %vm214_vm0, %v144_v6  ;;  %v175_v4 = vld [vmem:[%s4430_s0 + $0x508] sm:$0xff]  ;;  %v80_v5 = vld [vmem:[%s4430_s0 + $0x210] sm:$0xff] }
  0x47   :  { %v176_v6 = vld [vmem:[%s4430_s0 + $0x510] sm:$0xff] }
  0x49   :  { %2453 = vmatmul.mubr.msk.f32.gmra.mrb[34].mxu0 %vm214_vm0, %v49_v7  ;;  %2597 = vmatmul.mubr.msk.f32.gmra.mrb[34].mxu1 %vm214_vm0, %v145_v8  ;;  %v81_v7 = vld [vmem:[%s4430_s0 + $0x218] sm:$0xff] }
  0x4a   :  { %2455 = vmatprep.mubr.msk.f32.mxu0 %vm214_vm0, %v50_v9  ;;  %2599 = vmatprep.mubr.msk.f32.mxu1 %vm214_vm0, %v146_v10  ;;  %v177_v8 = vld [vmem:[%s4430_s0 + $0x518] sm:$0xff]  ;;  %v82_v9 = vld [vmem:[%s4430_s0 + $0x220] sm:$0xff] }
  0x4b   :  { %v178_v10 = vld [vmem:[%s4430_s0 + $0x520] sm:$0xff] }
  0x4d   :  { %2456 = vmatmul.mubr.msk.f32.gmra.mrb[36].mxu0 %vm214_vm0, %v51_v11  ;;  %2600 = vmatmul.mubr.msk.f32.gmra.mrb[36].mxu1 %vm214_vm0, %v147_v12  ;;  %v83_v11 = vld [vmem:[%s4430_s0 + $0x228] sm:$0xff] }
  0x4e   :  { %2458 = vmatprep.mubr.msk.f32.mxu0 %vm214_vm0, %v52_v13  ;;  %2602 = vmatprep.mubr.msk.f32.mxu1 %vm214_vm0, %v148_v14  ;;  %v179_v12 = vld [vmem:[%s4430_s0 + $0x528] sm:$0xff]  ;;  %v84_v13 = vld [vmem:[%s4430_s0 + $0x230] sm:$0xff] }
  0x4f   :  { %v180_v14 = vld [vmem:[%s4430_s0 + $0x530] sm:$0xff] }
  0x51   :  { %2459 = vmatmul.mubr.msk.f32.gmra.mrb[38].mxu0 %vm214_vm0, %v53_v15  ;;  %2603 = vmatmul.mubr.msk.f32.gmra.mrb[38].mxu1 %vm214_vm0, %v149_v16  ;;  %v85_v15 = vld [vmem:[%s4430_s0 + $0x238] sm:$0xff] }
  0x52   :  { %2461 = vmatprep.mubr.msk.f32.mxu0 %vm214_vm0, %v54_v17  ;;  %2605 = vmatprep.mubr.msk.f32.mxu1 %vm214_vm0, %v150_v18  ;;  %v181_v16 = vld [vmem:[%s4430_s0 + $0x538] sm:$0xff]  ;;  %v86_v17 = vld [vmem:[%s4430_s0 + $0x240] sm:$0xff] }
  0x53   :  { %v182_v18 = vld [vmem:[%s4430_s0 + $0x540] sm:$0xff] }
  0x55   :  { %2462 = vmatmul.mubr.msk.f32.gmra.mrb[40].mxu0 %vm214_vm0, %v55_v19  ;;  %2606 = vmatmul.mubr.msk.f32.gmra.mrb[40].mxu1 %vm214_vm0, %v151_v20  ;;  %v87_v19 = vld [vmem:[%s4430_s0 + $0x248] sm:$0xff] }
  0x56   :  { %2464 = vmatprep.mubr.msk.f32.mxu0 %vm214_vm0, %v56_v21  ;;  %2608 = vmatprep.mubr.msk.f32.mxu1 %vm214_vm0, %v152_v22  ;;  %v183_v20 = vld [vmem:[%s4430_s0 + $0x548] sm:$0xff]  ;;  %v88_v21 = vld [vmem:[%s4430_s0 + $0x250] sm:$0xff] }
  0x57   :  { %v184_v22 = vld [vmem:[%s4430_s0 + $0x550] sm:$0xff] }
  0x59   :  { %2465 = vmatmul.mubr.msk.f32.gmra.mrb[42].mxu0 %vm214_vm0, %v57_v23  ;;  %2609 = vmatmul.mubr.msk.f32.gmra.mrb[42].mxu1 %vm214_vm0, %v153_v24  ;;  %v89_v23 = vld [vmem:[%s4430_s0 + $0x258] sm:$0xff] }
  0x5a   :  { %2467 = vmatprep.mubr.msk.f32.mxu0 %vm214_vm0, %v58_v25  ;;  %2611 = vmatprep.mubr.msk.f32.mxu1 %vm214_vm0, %v154_v26  ;;  %v185_v24 = vld [vmem:[%s4430_s0 + $0x558] sm:$0xff]  ;;  %v90_v25 = vld [vmem:[%s4430_s0 + $0x260] sm:$0xff] }
  0x5b   :  { %v186_v26 = vld [vmem:[%s4430_s0 + $0x560] sm:$0xff] }
  0x5d   :  { %2468 = vmatmul.mubr.msk.f32.gmra.mrb[44].mxu0 %vm214_vm0, %v59_v27  ;;  %2612 = vmatmul.mubr.msk.f32.gmra.mrb[44].mxu1 %vm214_vm0, %v155_v28  ;;  %v91_v27 = vld [vmem:[%s4430_s0 + $0x268] sm:$0xff] }
  0x5e   :  { %2470 = vmatprep.mubr.msk.f32.mxu0 %vm214_vm0, %v60_v29  ;;  %2614 = vmatprep.mubr.msk.f32.mxu1 %vm214_vm0, %v156_v30  ;;  %v187_v28 = vld [vmem:[%s4430_s0 + $0x568] sm:$0xff]  ;;  %v92_v29 = vld [vmem:[%s4430_s0 + $0x270] sm:$0xff] }
  0x5f   :  { %v188_v30 = vld [vmem:[%s4430_s0 + $0x570] sm:$0xff] }
  0x61   :  { %2471 = vmatmul.mubr.msk.f32.gmra.mrb[46].mxu0 %vm214_vm0, %v61_v31  ;;  %2615 = vmatmul.mubr.msk.f32.gmra.mrb[46].mxu1 %vm214_vm0, %v157_v32  ;;  %v93_v31 = vld [vmem:[%s4430_s0 + $0x278] sm:$0xff] }
  0x62   :  { %2473 = vmatprep.mubr.msk.f32.mxu0 %vm214_vm0, %v62_v33  ;;  %2617 = vmatprep.mubr.msk.f32.mxu1 %vm214_vm0, %v158_v34  ;;  %v189_v32 = vld [vmem:[%s4430_s0 + $0x578] sm:$0xff]  ;;  %v94_v33 = vld [vmem:[%s4430_s0 + $0x280] sm:$0xff] }
  0x63   :  { %v190_v34 = vld [vmem:[%s4430_s0 + $0x580] sm:$0xff] }
  0x65   :  { %2474 = vmatmul.mubr.msk.f32.gmra.mrb[48].mxu0 %vm214_vm0, %v63_v35  ;;  %2618 = vmatmul.mubr.msk.f32.gmra.mrb[48].mxu1 %vm214_vm0, %v159_v36  ;;  %v95_v35 = vld [vmem:[%s4430_s0 + $0x288] sm:$0xff] }
  0x66   :  { %2476 = vmatprep.mubr.msk.f32.mxu0 %vm214_vm0, %v64_v37  ;;  %2620 = vmatprep.mubr.msk.f32.mxu1 %vm214_vm0, %v160_v38  ;;  %v191_v36 = vld [vmem:[%s4430_s0 + $0x588] sm:$0xff]  ;;  %v96_v37 = vld [vmem:[%s4430_s0 + $0x290] sm:$0xff] }
  0x67   :  { %v192_v38 = vld [vmem:[%s4430_s0 + $0x590] sm:$0xff] }
  0x69   :  { %2477 = vmatmul.mubr.msk.f32.gmra.mrb[50].mxu0 %vm214_vm0, %v65_v39  ;;  %2621 = vmatmul.mubr.msk.f32.gmra.mrb[50].mxu1 %vm214_vm0, %v161_v40  ;;  %v97_v39 = vld [vmem:[%s4430_s0 + $0x298] sm:$0xff] }
  0x6a   :  { %2479 = vmatprep.mubr.msk.f32.mxu0 %vm214_vm0, %v66_v41  ;;  %2623 = vmatprep.mubr.msk.f32.mxu1 %vm214_vm0, %v162_v42  ;;  %v193_v40 = vld [vmem:[%s4430_s0 + $0x598] sm:$0xff]  ;;  %v98_v41 = vld [vmem:[%s4430_s0 + $0x2a0] sm:$0xff] }
  0x6b   :  { %v194_v42 = vld [vmem:[%s4430_s0 + $0x5a0] sm:$0xff] }
  0x6d   :  { %2480 = vmatmul.mubr.msk.f32.gmra.mrb[52].mxu0 %vm214_vm0, %v67_v43  ;;  %2624 = vmatmul.mubr.msk.f32.gmra.mrb[52].mxu1 %vm214_vm0, %v163_v44  ;;  %v99_v43 = vld [vmem:[%s4430_s0 + $0x2a8] sm:$0xff] }
  0x6e   :  { %2482 = vmatprep.mubr.msk.f32.mxu0 %vm214_vm0, %v68_v45  ;;  %2626 = vmatprep.mubr.msk.f32.mxu1 %vm214_vm0, %v164_v46  ;;  %v195_v44 = vld [vmem:[%s4430_s0 + $0x5a8] sm:$0xff]  ;;  %v100_v45 = vld [vmem:[%s4430_s0 + $0x2b0] sm:$0xff] }
  0x6f   :  { %v196_v46 = vld [vmem:[%s4430_s0 + $0x5b0] sm:$0xff] }
  0x71   :  { %2483 = vmatmul.mubr.msk.f32.gmra.mrb[54].mxu0 %vm214_vm0, %v69_v47  ;;  %2627 = vmatmul.mubr.msk.f32.gmra.mrb[54].mxu1 %vm214_vm0, %v165_v48  ;;  %v101_v47 = vld [vmem:[%s4430_s0 + $0x2b8] sm:$0xff] }
  0x72   :  { %2485 = vmatprep.mubr.msk.f32.mxu0 %vm214_vm0, %v70_v49  ;;  %2629 = vmatprep.mubr.msk.f32.mxu1 %vm214_vm0, %v166_v50  ;;  %v197_v48 = vld [vmem:[%s4430_s0 + $0x5b8] sm:$0xff]  ;;  %v102_v49 = vld [vmem:[%s4430_s0 + $0x2c0] sm:$0xff] }
  0x73   :  { %v198_v50 = vld [vmem:[%s4430_s0 + $0x5c0] sm:$0xff] }
  0x75   :  { %2486 = vmatmul.mubr.msk.f32.gmra.mrb[56].mxu0 %vm214_vm0, %v71_v51  ;;  %2630 = vmatmul.mubr.msk.f32.gmra.mrb[56].mxu1 %vm214_vm0, %v167_v52  ;;  %v103_v51 = vld [vmem:[%s4430_s0 + $0x2c8] sm:$0xff] }
  0x76   :  { %2488 = vmatprep.mubr.msk.f32.mxu0 %vm214_vm0, %v72_v53  ;;  %2632 = vmatprep.mubr.msk.f32.mxu1 %vm214_vm0, %v168_v54  ;;  %v199_v52 = vld [vmem:[%s4430_s0 + $0x5c8] sm:$0xff]  ;;  %v104_v53 = vld [vmem:[%s4430_s0 + $0x2d0] sm:$0xff] }
  0x77   :  { %v200_v54 = vld [vmem:[%s4430_s0 + $0x5d0] sm:$0xff] }
  0x79   :  { %2489 = vmatmul.mubr.msk.f32.gmra.mrb[58].mxu0 %vm214_vm0, %v73_v55  ;;  %2633 = vmatmul.mubr.msk.f32.gmra.mrb[58].mxu1 %vm214_vm0, %v169_v56  ;;  %v105_v55 = vld [vmem:[%s4430_s0 + $0x2d8] sm:$0xff] }
  0x7a   :  { %2491 = vmatprep.mubr.msk.f32.mxu0 %vm214_vm0, %v74_v57  ;;  %2635 = vmatprep.mubr.msk.f32.mxu1 %vm214_vm0, %v170_v58  ;;  %v201_v56 = vld [vmem:[%s4430_s0 + $0x5d8] sm:$0xff]  ;;  %v106_v57 = vld [vmem:[%s4430_s0 + $0x2e0] sm:$0xff] }
  0x7b   :  { %v202_v58 = vld [vmem:[%s4430_s0 + $0x5e0] sm:$0xff] }
  0x7d   :  { %2492 = vmatmul.mubr.msk.f32.gmra.mrb[60].mxu0 %vm214_vm0, %v75_v59  ;;  %2636 = vmatmul.mubr.msk.f32.gmra.mrb[60].mxu1 %vm214_vm0, %v171_v60  ;;  %v107_v59 = vld [vmem:[%s4430_s0 + $0x2e8] sm:$0xff] }
  0x7e   :  { %2494 = vmatprep.mubr.msk.f32.mxu0 %vm214_vm0, %v76_v61  ;;  %2638 = vmatprep.mubr.msk.f32.mxu1 %vm214_vm0, %v172_v62  ;;  %v203_v60 = vld [vmem:[%s4430_s0 + $0x5e8] sm:$0xff]  ;;  %v108_v61 = vld [vmem:[%s4430_s0 + $0x2f0] sm:$0xff] }
  0x7f   :  { %v204_v62 = vld [vmem:[%s4430_s0 + $0x5f0] sm:$0xff] }
  0x81   :  { %2495 = vmatmul.mubr.msk.f32.gmra.mrb[62].mxu0 %vm214_vm0, %v77_v63  ;;  %2639 = vmatmul.mubr.msk.f32.gmra.mrb[62].mxu1 %vm214_vm0, %v173_v0  ;;  %v109_v63 = vld [vmem:[%s4430_s0 + $0x2f8] sm:$0xff] }
  0x82   :  { %2497 = vmatprep.mubr.msk.f32.mxu0 %vm214_vm0, %v78_v1  ;;  %2641 = vmatprep.mubr.msk.f32.mxu1 %vm214_vm0, %v174_v2  ;;  %v205_v0 = vld [vmem:[%s4430_s0 + $0x5f8] sm:$0xff]  ;;  %v3486_v1 = vld [vmem:[%s4431_s2] ss:$0 sm:$0xff] }
  0x85   :  { %2498 = vmatmul.mubr.msk.f32.gmra.mrb[64].mxu0 %vm214_vm0, %v79_v3  ;;  %2642 = vmatmul.mubr.msk.f32.gmra.mrb[64].mxu1 %vm214_vm0, %v175_v4 }
  0x86   :  { %2500 = vmatprep.mubr.msk.f32.mxu0 %vm214_vm0, %v80_v5  ;;  %2644 = vmatprep.mubr.msk.f32.mxu1 %vm214_vm0, %v176_v6 }
  0x89   :  { %2501 = vmatmul.mubr.msk.f32.gmra.mrb[66].mxu0 %vm214_vm0, %v81_v7  ;;  %2645 = vmatmul.mubr.msk.f32.gmra.mrb[66].mxu1 %vm214_vm0, %v177_v8 }
  0x8a   :  { %2503 = vmatprep.mubr.msk.f32.mxu0 %vm214_vm0, %v82_v9  ;;  %2647 = vmatprep.mubr.msk.f32.mxu1 %vm214_vm0, %v178_v10 }
  0x8d   :  { %2504 = vmatmul.mubr.msk.f32.gmra.mrb[68].mxu0 %vm214_vm0, %v83_v11  ;;  %2648 = vmatmul.mubr.msk.f32.gmra.mrb[68].mxu1 %vm214_vm0, %v179_v12 }
  0x8e   :  { %2506 = vmatprep.mubr.msk.f32.mxu0 %vm214_vm0, %v84_v13  ;;  %2650 = vmatprep.mubr.msk.f32.mxu1 %vm214_vm0, %v180_v14 }
  0x91   :  { %2507 = vmatmul.mubr.msk.f32.gmra.mrb[70].mxu0 %vm214_vm0, %v85_v15  ;;  %2651 = vmatmul.mubr.msk.f32.gmra.mrb[70].mxu1 %vm214_vm0, %v181_v16 }
  0x92   :  { %2509 = vmatprep.mubr.msk.f32.mxu0 %vm214_vm0, %v86_v17  ;;  %2653 = vmatprep.mubr.msk.f32.mxu1 %vm214_vm0, %v182_v18 }
  0x95   :  { %2510 = vmatmul.mubr.msk.f32.gmra.mrb[72].mxu0 %vm214_vm0, %v87_v19  ;;  %2654 = vmatmul.mubr.msk.f32.gmra.mrb[72].mxu1 %vm214_vm0, %v183_v20 }
  0x96   :  { %2512 = vmatprep.mubr.msk.f32.mxu0 %vm214_vm0, %v88_v21  ;;  %2656 = vmatprep.mubr.msk.f32.mxu1 %vm214_vm0, %v184_v22 }
  0x99   :  { %2513 = vmatmul.mubr.msk.f32.gmra.mrb[74].mxu0 %vm214_vm0, %v89_v23  ;;  %2657 = vmatmul.mubr.msk.f32.gmra.mrb[74].mxu1 %vm214_vm0, %v185_v24 }
  0x9a   :  { %2515 = vmatprep.mubr.msk.f32.mxu0 %vm214_vm0, %v90_v25  ;;  %2659 = vmatprep.mubr.msk.f32.mxu1 %vm214_vm0, %v186_v26 }
  0x9d   :  { %2516 = vmatmul.mubr.msk.f32.gmra.mrb[76].mxu0 %vm214_vm0, %v91_v27  ;;  %2660 = vmatmul.mubr.msk.f32.gmra.mrb[76].mxu1 %vm214_vm0, %v187_v28 }
  0x9e   :  { %2518 = vmatprep.mubr.msk.f32.mxu0 %vm214_vm0, %v92_v29  ;;  %2662 = vmatprep.mubr.msk.f32.mxu1 %vm214_vm0, %v188_v30 }
  0xa1   :  { %2519 = vmatmul.mubr.msk.f32.gmra.mrb[78].mxu0 %vm214_vm0, %v93_v31  ;;  %2663 = vmatmul.mubr.msk.f32.gmra.mrb[78].mxu1 %vm214_vm0, %v189_v32 }
  0xa2   :  { %2521 = vmatprep.mubr.msk.f32.mxu0 %vm214_vm0, %v94_v33  ;;  %2665 = vmatprep.mubr.msk.f32.mxu1 %vm214_vm0, %v190_v34 }
  0xa5   :  { %2522 = vmatmul.mubr.msk.f32.gmra.mrb[80].mxu0 %vm214_vm0, %v95_v35  ;;  %2666 = vmatmul.mubr.msk.f32.gmra.mrb[80].mxu1 %vm214_vm0, %v191_v36 }
  0xa6   :  { %2524 = vmatprep.mubr.msk.f32.mxu0 %vm214_vm0, %v96_v37  ;;  %2668 = vmatprep.mubr.msk.f32.mxu1 %vm214_vm0, %v192_v38 }
  0xa9   :  { %2525 = vmatmul.mubr.msk.f32.gmra.mrb[82].mxu0 %vm214_vm0, %v97_v39  ;;  %2669 = vmatmul.mubr.msk.f32.gmra.mrb[82].mxu1 %vm214_vm0, %v193_v40 }
  0xaa   :  { %2527 = vmatprep.mubr.msk.f32.mxu0 %vm214_vm0, %v98_v41  ;;  %2671 = vmatprep.mubr.msk.f32.mxu1 %vm214_vm0, %v194_v42 }
  0xad   :  { %2528 = vmatmul.mubr.msk.f32.gmra.mrb[84].mxu0 %vm214_vm0, %v99_v43  ;;  %2672 = vmatmul.mubr.msk.f32.gmra.mrb[84].mxu1 %vm214_vm0, %v195_v44 }
  0xae   :  { %2530 = vmatprep.mubr.msk.f32.mxu0 %vm214_vm0, %v100_v45  ;;  %2674 = vmatprep.mubr.msk.f32.mxu1 %vm214_vm0, %v196_v46 }
  0xb1   :  { %2531 = vmatmul.mubr.msk.f32.gmra.mrb[86].mxu0 %vm214_vm0, %v101_v47  ;;  %2675 = vmatmul.mubr.msk.f32.gmra.mrb[86].mxu1 %vm214_vm0, %v197_v48 }
  0xb2   :  { %2533 = vmatprep.mubr.msk.f32.mxu0 %vm214_vm0, %v102_v49  ;;  %2677 = vmatprep.mubr.msk.f32.mxu1 %vm214_vm0, %v198_v50 }
  0xb5   :  { %2534 = vmatmul.mubr.msk.f32.gmra.mrb[88].mxu0 %vm214_vm0, %v103_v51  ;;  %2678 = vmatmul.mubr.msk.f32.gmra.mrb[88].mxu1 %vm214_vm0, %v199_v52 }
  0xb6   :  { %2536 = vmatprep.mubr.msk.f32.mxu0 %vm214_vm0, %v104_v53  ;;  %2680 = vmatprep.mubr.msk.f32.mxu1 %vm214_vm0, %v200_v54 }
  0xb9   :  { %2537 = vmatmul.mubr.msk.f32.gmra.mrb[90].mxu0 %vm214_vm0, %v105_v55  ;;  %2681 = vmatmul.mubr.msk.f32.gmra.mrb[90].mxu1 %vm214_vm0, %v201_v56 }
  0xba   :  { %2539 = vmatprep.mubr.msk.f32.mxu0 %vm214_vm0, %v106_v57  ;;  %2683 = vmatprep.mubr.msk.f32.mxu1 %vm214_vm0, %v202_v58 }
  0xbd   :  { %2540 = vmatmul.mubr.msk.f32.gmra.mrb[92].mxu0 %vm214_vm0, %v107_v59  ;;  %2684 = vmatmul.mubr.msk.f32.gmra.mrb[92].mxu1 %vm214_vm0, %v203_v60 }
  0xbe   :  { %2542 = vmatprep.mubr.msk.f32.mxu0 %vm214_vm0, %v108_v61  ;;  %2686 = vmatprep.mubr.msk.f32.mxu1 %vm214_vm0, %v204_v62 }
  0xc1   :  { %2543 = vmatmul.mubr.msk.f32.gmra.mrb[94].mxu0 %vm214_vm0, %v109_v63  ;;  %2687 = vmatmul.mubr.msk.f32.gmra.mrb[94].mxu1 %vm214_vm0, %v205_v0 }
  0xd8   :  { %v2403_v2 = vpop.f32.mrb[0].mxu0  ;;  %v2547_v3 = vpop.f32.mrb[0].mxu1 }
  0xd9   :  { %v863_v4 = vadd.f32 %v2403_v2, %v3486_v1  ;;  %v1343_v5 = vadd.f32 %v2547_v3, %v3486_v1  ;;  %v857_v6 = vpop.f32.mrb[1].mxu0  ;;  %v1337_v7 = vpop.f32.mrb[1].mxu1 }
  0xda   :  { %v858_v8 = vadd.f32 %v3486_v1, %v857_v6  ;;  %v1338_v9 = vadd.f32 %v3486_v1, %v1337_v7 }
  0xdb   :  { %1818 = vst.msk [vmem:[%s4432_s3 + $0x8] sm:$0xff] %vm1816_vm1, %v863_v4  ;;  %1914 = vst.msk [vmem:[%s4432_s3 + $0x308] sm:$0xff] %vm1816_vm1, %v1343_v5 }
  0xdc   :  { %1817 = vst.msk [vmem:[%s4432_s3] sm:$0xff] %vm1816_vm1, %v858_v8  ;;  %1913 = vst.msk [vmem:[%s4432_s3 + $0x300] sm:$0xff] %vm1816_vm1, %v1338_v9  ;;  %v2406_v10 = vpop.f32.mrb[2].mxu0  ;;  %v2550_v11 = vpop.f32.mrb[2].mxu1 }
  0xdd   :  { %v873_v12 = vadd.f32 %v2406_v10, %v3486_v1  ;;  %v1353_v13 = vadd.f32 %v2550_v11, %v3486_v1  ;;  %v867_v14 = vpop.f32.mrb[3].mxu0  ;;  %v1347_v15 = vpop.f32.mrb[3].mxu1 }
  0xde   :  { %v868_v16 = vadd.f32 %v3486_v1, %v867_v14  ;;  %v1348_v17 = vadd.f32 %v3486_v1, %v1347_v15 }
  0xdf   :  { %1820 = vst.msk [vmem:[%s4432_s3 + $0x18] sm:$0xff] %vm1816_vm1, %v873_v12  ;;  %1916 = vst.msk [vmem:[%s4432_s3 + $0x318] sm:$0xff] %vm1816_vm1, %v1353_v13 }
  0xe0   :  { %1819 = vst.msk [vmem:[%s4432_s3 + $0x10] sm:$0xff] %vm1816_vm1, %v868_v16  ;;  %1915 = vst.msk [vmem:[%s4432_s3 + $0x310] sm:$0xff] %vm1816_vm1, %v1348_v17  ;;  %v2409_v18 = vpop.f32.mrb[4].mxu0  ;;  %v2553_v19 = vpop.f32.mrb[4].mxu1 }
  0xe1   :  { %v883_v20 = vadd.f32 %v2409_v18, %v3486_v1  ;;  %v1363_v21 = vadd.f32 %v2553_v19, %v3486_v1  ;;  %v877_v22 = vpop.f32.mrb[5].mxu0  ;;  %v1357_v23 = vpop.f32.mrb[5].mxu1 }
  0xe2   :  { %v878_v24 = vadd.f32 %v3486_v1, %v877_v22  ;;  %v1358_v25 = vadd.f32 %v3486_v1, %v1357_v23 }
  0xe3   :  { %1822 = vst.msk [vmem:[%s4432_s3 + $0x28] sm:$0xff] %vm1816_vm1, %v883_v20  ;;  %1918 = vst.msk [vmem:[%s4432_s3 + $0x328] sm:$0xff] %vm1816_vm1, %v1363_v21 }
  0xe4   :  { %1821 = vst.msk [vmem:[%s4432_s3 + $0x20] sm:$0xff] %vm1816_vm1, %v878_v24  ;;  %1917 = vst.msk [vmem:[%s4432_s3 + $0x320] sm:$0xff] %vm1816_vm1, %v1358_v25  ;;  %v2412_v26 = vpop.f32.mrb[6].mxu0  ;;  %v2556_v27 = vpop.f32.mrb[6].mxu1 }
  0xe5   :  { %v893_v28 = vadd.f32 %v2412_v26, %v3486_v1  ;;  %v1373_v29 = vadd.f32 %v2556_v27, %v3486_v1  ;;  %v887_v30 = vpop.f32.mrb[7].mxu0  ;;  %v1367_v31 = vpop.f32.mrb[7].mxu1 }
  0xe6   :  { %v888_v32 = vadd.f32 %v3486_v1, %v887_v30  ;;  %v1368_v33 = vadd.f32 %v3486_v1, %v1367_v31 }
  0xe7   :  { %1824 = vst.msk [vmem:[%s4432_s3 + $0x38] sm:$0xff] %vm1816_vm1, %v893_v28  ;;  %1920 = vst.msk [vmem:[%s4432_s3 + $0x338] sm:$0xff] %vm1816_vm1, %v1373_v29 }
  0xe8   :  { %1823 = vst.msk [vmem:[%s4432_s3 + $0x30] sm:$0xff] %vm1816_vm1, %v888_v32  ;;  %1919 = vst.msk [vmem:[%s4432_s3 + $0x330] sm:$0xff] %vm1816_vm1, %v1368_v33  ;;  %v2415_v34 = vpop.f32.mrb[8].mxu0  ;;  %v2559_v35 = vpop.f32.mrb[8].mxu1 }
  0xe9   :  { %v903_v36 = vadd.f32 %v2415_v34, %v3486_v1  ;;  %v1383_v37 = vadd.f32 %v2559_v35, %v3486_v1  ;;  %v897_v38 = vpop.f32.mrb[9].mxu0  ;;  %v1377_v39 = vpop.f32.mrb[9].mxu1 }
  0xea   :  { %v898_v40 = vadd.f32 %v3486_v1, %v897_v38  ;;  %v1378_v41 = vadd.f32 %v3486_v1, %v1377_v39 }
  0xeb   :  { %1826 = vst.msk [vmem:[%s4432_s3 + $0x48] sm:$0xff] %vm1816_vm1, %v903_v36  ;;  %1922 = vst.msk [vmem:[%s4432_s3 + $0x348] sm:$0xff] %vm1816_vm1, %v1383_v37 }
  0xec   :  { %1825 = vst.msk [vmem:[%s4432_s3 + $0x40] sm:$0xff] %vm1816_vm1, %v898_v40  ;;  %1921 = vst.msk [vmem:[%s4432_s3 + $0x340] sm:$0xff] %vm1816_vm1, %v1378_v41  ;;  %v2418_v42 = vpop.f32.mrb[10].mxu0  ;;  %v2562_v43 = vpop.f32.mrb[10].mxu1 }
  0xed   :  { %v913_v44 = vadd.f32 %v2418_v42, %v3486_v1  ;;  %v1393_v45 = vadd.f32 %v2562_v43, %v3486_v1  ;;  %v907_v46 = vpop.f32.mrb[11].mxu0  ;;  %v1387_v47 = vpop.f32.mrb[11].mxu1 }
  0xee   :  { %v908_v48 = vadd.f32 %v3486_v1, %v907_v46  ;;  %v1388_v49 = vadd.f32 %v3486_v1, %v1387_v47 }
  0xef   :  { %1828 = vst.msk [vmem:[%s4432_s3 + $0x58] sm:$0xff] %vm1816_vm1, %v913_v44  ;;  %1924 = vst.msk [vmem:[%s4432_s3 + $0x358] sm:$0xff] %vm1816_vm1, %v1393_v45 }
  0xf0   :  { %1827 = vst.msk [vmem:[%s4432_s3 + $0x50] sm:$0xff] %vm1816_vm1, %v908_v48  ;;  %1923 = vst.msk [vmem:[%s4432_s3 + $0x350] sm:$0xff] %vm1816_vm1, %v1388_v49  ;;  %v2421_v50 = vpop.f32.mrb[12].mxu0  ;;  %v2565_v51 = vpop.f32.mrb[12].mxu1 }
  0xf1   :  { %v923_v52 = vadd.f32 %v2421_v50, %v3486_v1  ;;  %v1403_v53 = vadd.f32 %v2565_v51, %v3486_v1  ;;  %v917_v54 = vpop.f32.mrb[13].mxu0  ;;  %v1397_v55 = vpop.f32.mrb[13].mxu1 }
  0xf2   :  { %v918_v56 = vadd.f32 %v3486_v1, %v917_v54  ;;  %v1398_v57 = vadd.f32 %v3486_v1, %v1397_v55 }
  0xf3   :  { %1830 = vst.msk [vmem:[%s4432_s3 + $0x68] sm:$0xff] %vm1816_vm1, %v923_v52  ;;  %1926 = vst.msk [vmem:[%s4432_s3 + $0x368] sm:$0xff] %vm1816_vm1, %v1403_v53 }
  0xf4   :  { %1829 = vst.msk [vmem:[%s4432_s3 + $0x60] sm:$0xff] %vm1816_vm1, %v918_v56  ;;  %1925 = vst.msk [vmem:[%s4432_s3 + $0x360] sm:$0xff] %vm1816_vm1, %v1398_v57  ;;  %v2424_v58 = vpop.f32.mrb[14].mxu0  ;;  %v2568_v59 = vpop.f32.mrb[14].mxu1 }
  0xf5   :  { %v933_v60 = vadd.f32 %v2424_v58, %v3486_v1  ;;  %v1413_v61 = vadd.f32 %v2568_v59, %v3486_v1  ;;  %v927_v62 = vpop.f32.mrb[15].mxu0  ;;  %v1407_v63 = vpop.f32.mrb[15].mxu1 }
  0xf6   :  { %v928_v0 = vadd.f32 %v3486_v1, %v927_v62  ;;  %v1408_v2 = vadd.f32 %v3486_v1, %v1407_v63 }
  0xf7   :  { %1832 = vst.msk [vmem:[%s4432_s3 + $0x78] sm:$0xff] %vm1816_vm1, %v933_v60  ;;  %1928 = vst.msk [vmem:[%s4432_s3 + $0x378] sm:$0xff] %vm1816_vm1, %v1413_v61 }
  0xf8   :  { %1831 = vst.msk [vmem:[%s4432_s3 + $0x70] sm:$0xff] %vm1816_vm1, %v928_v0  ;;  %1927 = vst.msk [vmem:[%s4432_s3 + $0x370] sm:$0xff] %vm1816_vm1, %v1408_v2  ;;  %v2427_v3 = vpop.f32.mrb[16].mxu0  ;;  %v2571_v4 = vpop.f32.mrb[16].mxu1 }
  0xf9   :  { %v943_v5 = vadd.f32 %v2427_v3, %v3486_v1  ;;  %v1423_v6 = vadd.f32 %v2571_v4, %v3486_v1  ;;  %v937_v7 = vpop.f32.mrb[17].mxu0  ;;  %v1417_v8 = vpop.f32.mrb[17].mxu1 }
  0xfa   :  { %v938_v9 = vadd.f32 %v3486_v1, %v937_v7  ;;  %v1418_v10 = vadd.f32 %v3486_v1, %v1417_v8 }
  0xfb   :  { %1834 = vst.msk [vmem:[%s4432_s3 + $0x88] sm:$0xff] %vm1816_vm1, %v943_v5  ;;  %1930 = vst.msk [vmem:[%s4432_s3 + $0x388] sm:$0xff] %vm1816_vm1, %v1423_v6 }
  0xfc   :  { %1833 = vst.msk [vmem:[%s4432_s3 + $0x80] sm:$0xff] %vm1816_vm1, %v938_v9  ;;  %1929 = vst.msk [vmem:[%s4432_s3 + $0x380] sm:$0xff] %vm1816_vm1, %v1418_v10  ;;  %v2430_v11 = vpop.f32.mrb[18].mxu0  ;;  %v2574_v12 = vpop.f32.mrb[18].mxu1 }
  0xfd   :  { %v953_v13 = vadd.f32 %v2430_v11, %v3486_v1  ;;  %v1433_v14 = vadd.f32 %v2574_v12, %v3486_v1  ;;  %v947_v15 = vpop.f32.mrb[19].mxu0  ;;  %v1427_v16 = vpop.f32.mrb[19].mxu1 }
  0xfe   :  { %v948_v17 = vadd.f32 %v3486_v1, %v947_v15  ;;  %v1428_v18 = vadd.f32 %v3486_v1, %v1427_v16 }
  0xff   :  { %1836 = vst.msk [vmem:[%s4432_s3 + $0x98] sm:$0xff] %vm1816_vm1, %v953_v13  ;;  %1932 = vst.msk [vmem:[%s4432_s3 + $0x398] sm:$0xff] %vm1816_vm1, %v1433_v14 }
 0x100   :  { %1835 = vst.msk [vmem:[%s4432_s3 + $0x90] sm:$0xff] %vm1816_vm1, %v948_v17  ;;  %1931 = vst.msk [vmem:[%s4432_s3 + $0x390] sm:$0xff] %vm1816_vm1, %v1428_v18  ;;  %v2433_v19 = vpop.f32.mrb[20].mxu0  ;;  %v2577_v20 = vpop.f32.mrb[20].mxu1 }
 0x101   :  { %v963_v21 = vadd.f32 %v2433_v19, %v3486_v1  ;;  %v1443_v22 = vadd.f32 %v2577_v20, %v3486_v1  ;;  %v957_v23 = vpop.f32.mrb[21].mxu0  ;;  %v1437_v24 = vpop.f32.mrb[21].mxu1 }
 0x102   :  { %v958_v25 = vadd.f32 %v3486_v1, %v957_v23  ;;  %v1438_v26 = vadd.f32 %v3486_v1, %v1437_v24 }
 0x103   :  { %1838 = vst.msk [vmem:[%s4432_s3 + $0xa8] sm:$0xff] %vm1816_vm1, %v963_v21  ;;  %1934 = vst.msk [vmem:[%s4432_s3 + $0x3a8] sm:$0xff] %vm1816_vm1, %v1443_v22 }
 0x104   :  { %1837 = vst.msk [vmem:[%s4432_s3 + $0xa0] sm:$0xff] %vm1816_vm1, %v958_v25  ;;  %1933 = vst.msk [vmem:[%s4432_s3 + $0x3a0] sm:$0xff] %vm1816_vm1, %v1438_v26  ;;  %v2436_v27 = vpop.f32.mrb[22].mxu0  ;;  %v2580_v28 = vpop.f32.mrb[22].mxu1 }
 0x105   :  { %v973_v29 = vadd.f32 %v2436_v27, %v3486_v1  ;;  %v1453_v30 = vadd.f32 %v2580_v28, %v3486_v1  ;;  %v967_v31 = vpop.f32.mrb[23].mxu0  ;;  %v1447_v32 = vpop.f32.mrb[23].mxu1 }
 0x106   :  { %v968_v33 = vadd.f32 %v3486_v1, %v967_v31  ;;  %v1448_v34 = vadd.f32 %v3486_v1, %v1447_v32 }
 0x107   :  { %1840 = vst.msk [vmem:[%s4432_s3 + $0xb8] sm:$0xff] %vm1816_vm1, %v973_v29  ;;  %1936 = vst.msk [vmem:[%s4432_s3 + $0x3b8] sm:$0xff] %vm1816_vm1, %v1453_v30 }
 0x108   :  { %1839 = vst.msk [vmem:[%s4432_s3 + $0xb0] sm:$0xff] %vm1816_vm1, %v968_v33  ;;  %1935 = vst.msk [vmem:[%s4432_s3 + $0x3b0] sm:$0xff] %vm1816_vm1, %v1448_v34  ;;  %v2439_v35 = vpop.f32.mrb[24].mxu0  ;;  %v2583_v36 = vpop.f32.mrb[24].mxu1 }
 0x109   :  { %v983_v37 = vadd.f32 %v2439_v35, %v3486_v1  ;;  %v1463_v38 = vadd.f32 %v2583_v36, %v3486_v1  ;;  %v977_v39 = vpop.f32.mrb[25].mxu0  ;;  %v1457_v40 = vpop.f32.mrb[25].mxu1 }
 0x10a   :  { %v978_v41 = vadd.f32 %v3486_v1, %v977_v39  ;;  %v1458_v42 = vadd.f32 %v3486_v1, %v1457_v40 }
 0x10b   :  { %1842 = vst.msk [vmem:[%s4432_s3 + $0xc8] sm:$0xff] %vm1816_vm1, %v983_v37  ;;  %1938 = vst.msk [vmem:[%s4432_s3 + $0x3c8] sm:$0xff] %vm1816_vm1, %v1463_v38 }
 0x10c   :  { %1841 = vst.msk [vmem:[%s4432_s3 + $0xc0] sm:$0xff] %vm1816_vm1, %v978_v41  ;;  %1937 = vst.msk [vmem:[%s4432_s3 + $0x3c0] sm:$0xff] %vm1816_vm1, %v1458_v42  ;;  %v2442_v43 = vpop.f32.mrb[26].mxu0  ;;  %v2586_v44 = vpop.f32.mrb[26].mxu1 }
 0x10d   :  { %v993_v45 = vadd.f32 %v2442_v43, %v3486_v1  ;;  %v1473_v46 = vadd.f32 %v2586_v44, %v3486_v1  ;;  %v987_v47 = vpop.f32.mrb[27].mxu0  ;;  %v1467_v48 = vpop.f32.mrb[27].mxu1 }
 0x10e   :  { %v988_v49 = vadd.f32 %v3486_v1, %v987_v47  ;;  %v1468_v50 = vadd.f32 %v3486_v1, %v1467_v48 }
 0x10f   :  { %1844 = vst.msk [vmem:[%s4432_s3 + $0xd8] sm:$0xff] %vm1816_vm1, %v993_v45  ;;  %1940 = vst.msk [vmem:[%s4432_s3 + $0x3d8] sm:$0xff] %vm1816_vm1, %v1473_v46 }
 0x110   :  { %1843 = vst.msk [vmem:[%s4432_s3 + $0xd0] sm:$0xff] %vm1816_vm1, %v988_v49  ;;  %1939 = vst.msk [vmem:[%s4432_s3 + $0x3d0] sm:$0xff] %vm1816_vm1, %v1468_v50  ;;  %v2445_v51 = vpop.f32.mrb[28].mxu0  ;;  %v2589_v52 = vpop.f32.mrb[28].mxu1 }
 0x111   :  { %v1003_v53 = vadd.f32 %v2445_v51, %v3486_v1  ;;  %v1483_v54 = vadd.f32 %v2589_v52, %v3486_v1  ;;  %v997_v55 = vpop.f32.mrb[29].mxu0  ;;  %v1477_v56 = vpop.f32.mrb[29].mxu1 }
 0x112   :  { %v998_v57 = vadd.f32 %v3486_v1, %v997_v55  ;;  %v1478_v58 = vadd.f32 %v3486_v1, %v1477_v56 }
 0x113   :  { %1846 = vst.msk [vmem:[%s4432_s3 + $0xe8] sm:$0xff] %vm1816_vm1, %v1003_v53  ;;  %1942 = vst.msk [vmem:[%s4432_s3 + $0x3e8] sm:$0xff] %vm1816_vm1, %v1483_v54 }
 0x114   :  { %1845 = vst.msk [vmem:[%s4432_s3 + $0xe0] sm:$0xff] %vm1816_vm1, %v998_v57  ;;  %1941 = vst.msk [vmem:[%s4432_s3 + $0x3e0] sm:$0xff] %vm1816_vm1, %v1478_v58  ;;  %v2448_v59 = vpop.f32.mrb[30].mxu0  ;;  %v2592_v60 = vpop.f32.mrb[30].mxu1 }
 0x115   :  { %v1013_v61 = vadd.f32 %v2448_v59, %v3486_v1  ;;  %v1493_v62 = vadd.f32 %v2592_v60, %v3486_v1  ;;  %v1007_v63 = vpop.f32.mrb[31].mxu0  ;;  %v1487_v0 = vpop.f32.mrb[31].mxu1 }
 0x116   :  { %v1008_v2 = vadd.f32 %v3486_v1, %v1007_v63  ;;  %v1488_v3 = vadd.f32 %v3486_v1, %v1487_v0 }
 0x117   :  { %1848 = vst.msk [vmem:[%s4432_s3 + $0xf8] sm:$0xff] %vm1816_vm1, %v1013_v61  ;;  %1944 = vst.msk [vmem:[%s4432_s3 + $0x3f8] sm:$0xff] %vm1816_vm1, %v1493_v62 }
 0x118   :  { %1847 = vst.msk [vmem:[%s4432_s3 + $0xf0] sm:$0xff] %vm1816_vm1, %v1008_v2  ;;  %1943 = vst.msk [vmem:[%s4432_s3 + $0x3f0] sm:$0xff] %vm1816_vm1, %v1488_v3  ;;  %v2451_v4 = vpop.f32.mrb[32].mxu0  ;;  %v2595_v5 = vpop.f32.mrb[32].mxu1 }
 0x119   :  { %v1023_v6 = vadd.f32 %v2451_v4, %v3486_v1  ;;  %v1503_v7 = vadd.f32 %v2595_v5, %v3486_v1  ;;  %v1017_v8 = vpop.f32.mrb[33].mxu0  ;;  %v1497_v9 = vpop.f32.mrb[33].mxu1 }
 0x11a   :  { %v1018_v10 = vadd.f32 %v3486_v1, %v1017_v8  ;;  %v1498_v11 = vadd.f32 %v3486_v1, %v1497_v9 }
 0x11b   :  { %1850 = vst.msk [vmem:[%s4432_s3 + $0x108] sm:$0xff] %vm1816_vm1, %v1023_v6  ;;  %1946 = vst.msk [vmem:[%s4432_s3 + $0x408] sm:$0xff] %vm1816_vm1, %v1503_v7 }
 0x11c   :  { %1849 = vst.msk [vmem:[%s4432_s3 + $0x100] sm:$0xff] %vm1816_vm1, %v1018_v10  ;;  %1945 = vst.msk [vmem:[%s4432_s3 + $0x400] sm:$0xff] %vm1816_vm1, %v1498_v11  ;;  %v2454_v12 = vpop.f32.mrb[34].mxu0  ;;  %v2598_v13 = vpop.f32.mrb[34].mxu1 }
 0x11d   :  { %v1033_v14 = vadd.f32 %v2454_v12, %v3486_v1  ;;  %v1513_v15 = vadd.f32 %v2598_v13, %v3486_v1  ;;  %v1027_v16 = vpop.f32.mrb[35].mxu0  ;;  %v1507_v17 = vpop.f32.mrb[35].mxu1 }
 0x11e   :  { %v1028_v18 = vadd.f32 %v3486_v1, %v1027_v16  ;;  %v1508_v19 = vadd.f32 %v3486_v1, %v1507_v17 }
 0x11f   :  { %1852 = vst.msk [vmem:[%s4432_s3 + $0x118] sm:$0xff] %vm1816_vm1, %v1033_v14  ;;  %1948 = vst.msk [vmem:[%s4432_s3 + $0x418] sm:$0xff] %vm1816_vm1, %v1513_v15 }
 0x120   :  { %1851 = vst.msk [vmem:[%s4432_s3 + $0x110] sm:$0xff] %vm1816_vm1, %v1028_v18  ;;  %1947 = vst.msk [vmem:[%s4432_s3 + $0x410] sm:$0xff] %vm1816_vm1, %v1508_v19  ;;  %v2457_v20 = vpop.f32.mrb[36].mxu0  ;;  %v2601_v21 = vpop.f32.mrb[36].mxu1 }
 0x121   :  { %v1043_v22 = vadd.f32 %v2457_v20, %v3486_v1  ;;  %v1523_v23 = vadd.f32 %v2601_v21, %v3486_v1  ;;  %v1037_v24 = vpop.f32.mrb[37].mxu0  ;;  %v1517_v25 = vpop.f32.mrb[37].mxu1 }
 0x122   :  { %v1038_v26 = vadd.f32 %v3486_v1, %v1037_v24  ;;  %v1518_v27 = vadd.f32 %v3486_v1, %v1517_v25 }
 0x123   :  { %1854 = vst.msk [vmem:[%s4432_s3 + $0x128] sm:$0xff] %vm1816_vm1, %v1043_v22  ;;  %1950 = vst.msk [vmem:[%s4432_s3 + $0x428] sm:$0xff] %vm1816_vm1, %v1523_v23 }
 0x124   :  { %1853 = vst.msk [vmem:[%s4432_s3 + $0x120] sm:$0xff] %vm1816_vm1, %v1038_v26  ;;  %1949 = vst.msk [vmem:[%s4432_s3 + $0x420] sm:$0xff] %vm1816_vm1, %v1518_v27  ;;  %v2460_v28 = vpop.f32.mrb[38].mxu0  ;;  %v2604_v29 = vpop.f32.mrb[38].mxu1 }
 0x125   :  { %v1053_v30 = vadd.f32 %v2460_v28, %v3486_v1  ;;  %v1533_v31 = vadd.f32 %v2604_v29, %v3486_v1  ;;  %v1047_v32 = vpop.f32.mrb[39].mxu0  ;;  %v1527_v33 = vpop.f32.mrb[39].mxu1 }
 0x126   :  { %v1048_v34 = vadd.f32 %v3486_v1, %v1047_v32  ;;  %v1528_v35 = vadd.f32 %v3486_v1, %v1527_v33 }
 0x127   :  { %1856 = vst.msk [vmem:[%s4432_s3 + $0x138] sm:$0xff] %vm1816_vm1, %v1053_v30  ;;  %1952 = vst.msk [vmem:[%s4432_s3 + $0x438] sm:$0xff] %vm1816_vm1, %v1533_v31 }
 0x128   :  { %1855 = vst.msk [vmem:[%s4432_s3 + $0x130] sm:$0xff] %vm1816_vm1, %v1048_v34  ;;  %1951 = vst.msk [vmem:[%s4432_s3 + $0x430] sm:$0xff] %vm1816_vm1, %v1528_v35  ;;  %v2463_v36 = vpop.f32.mrb[40].mxu0  ;;  %v2607_v37 = vpop.f32.mrb[40].mxu1 }
 0x129   :  { %v1063_v38 = vadd.f32 %v2463_v36, %v3486_v1  ;;  %v1543_v39 = vadd.f32 %v2607_v37, %v3486_v1  ;;  %v1057_v40 = vpop.f32.mrb[41].mxu0  ;;  %v1537_v41 = vpop.f32.mrb[41].mxu1 }
 0x12a   :  { %v1058_v42 = vadd.f32 %v3486_v1, %v1057_v40  ;;  %v1538_v43 = vadd.f32 %v3486_v1, %v1537_v41 }
 0x12b   :  { %1858 = vst.msk [vmem:[%s4432_s3 + $0x148] sm:$0xff] %vm1816_vm1, %v1063_v38  ;;  %1954 = vst.msk [vmem:[%s4432_s3 + $0x448] sm:$0xff] %vm1816_vm1, %v1543_v39 }
 0x12c   :  { %1857 = vst.msk [vmem:[%s4432_s3 + $0x140] sm:$0xff] %vm1816_vm1, %v1058_v42  ;;  %1953 = vst.msk [vmem:[%s4432_s3 + $0x440] sm:$0xff] %vm1816_vm1, %v1538_v43  ;;  %v2466_v44 = vpop.f32.mrb[42].mxu0  ;;  %v2610_v45 = vpop.f32.mrb[42].mxu1 }
 0x12d   :  { %v1073_v46 = vadd.f32 %v2466_v44, %v3486_v1  ;;  %v1553_v47 = vadd.f32 %v2610_v45, %v3486_v1  ;;  %v1067_v48 = vpop.f32.mrb[43].mxu0  ;;  %v1547_v49 = vpop.f32.mrb[43].mxu1 }
 0x12e   :  { %v1068_v50 = vadd.f32 %v3486_v1, %v1067_v48  ;;  %v1548_v51 = vadd.f32 %v3486_v1, %v1547_v49 }
 0x12f   :  { %1860 = vst.msk [vmem:[%s4432_s3 + $0x158] sm:$0xff] %vm1816_vm1, %v1073_v46  ;;  %1956 = vst.msk [vmem:[%s4432_s3 + $0x458] sm:$0xff] %vm1816_vm1, %v1553_v47 }
 0x130   :  { %1859 = vst.msk [vmem:[%s4432_s3 + $0x150] sm:$0xff] %vm1816_vm1, %v1068_v50  ;;  %1955 = vst.msk [vmem:[%s4432_s3 + $0x450] sm:$0xff] %vm1816_vm1, %v1548_v51  ;;  %v2469_v52 = vpop.f32.mrb[44].mxu0  ;;  %v2613_v53 = vpop.f32.mrb[44].mxu1 }
 0x131   :  { %v1083_v54 = vadd.f32 %v2469_v52, %v3486_v1  ;;  %v1563_v55 = vadd.f32 %v2613_v53, %v3486_v1  ;;  %v1077_v56 = vpop.f32.mrb[45].mxu0  ;;  %v1557_v57 = vpop.f32.mrb[45].mxu1 }
 0x132   :  { %v1078_v58 = vadd.f32 %v3486_v1, %v1077_v56  ;;  %v1558_v59 = vadd.f32 %v3486_v1, %v1557_v57 }
 0x133   :  { %1862 = vst.msk [vmem:[%s4432_s3 + $0x168] sm:$0xff] %vm1816_vm1, %v1083_v54  ;;  %1958 = vst.msk [vmem:[%s4432_s3 + $0x468] sm:$0xff] %vm1816_vm1, %v1563_v55 }
 0x134   :  { %1861 = vst.msk [vmem:[%s4432_s3 + $0x160] sm:$0xff] %vm1816_vm1, %v1078_v58  ;;  %1957 = vst.msk [vmem:[%s4432_s3 + $0x460] sm:$0xff] %vm1816_vm1, %v1558_v59  ;;  %v2472_v60 = vpop.f32.mrb[46].mxu0  ;;  %v2616_v61 = vpop.f32.mrb[46].mxu1 }
 0x135   :  { %v1093_v62 = vadd.f32 %v2472_v60, %v3486_v1  ;;  %v1573_v63 = vadd.f32 %v2616_v61, %v3486_v1  ;;  %v1087_v0 = vpop.f32.mrb[47].mxu0  ;;  %v1567_v2 = vpop.f32.mrb[47].mxu1 }
 0x136   :  { %v1088_v3 = vadd.f32 %v3486_v1, %v1087_v0  ;;  %v1568_v4 = vadd.f32 %v3486_v1, %v1567_v2 }
 0x137   :  { %1864 = vst.msk [vmem:[%s4432_s3 + $0x178] sm:$0xff] %vm1816_vm1, %v1093_v62  ;;  %1960 = vst.msk [vmem:[%s4432_s3 + $0x478] sm:$0xff] %vm1816_vm1, %v1573_v63 }
 0x138   :  { %1863 = vst.msk [vmem:[%s4432_s3 + $0x170] sm:$0xff] %vm1816_vm1, %v1088_v3  ;;  %1959 = vst.msk [vmem:[%s4432_s3 + $0x470] sm:$0xff] %vm1816_vm1, %v1568_v4  ;;  %v2475_v5 = vpop.f32.mrb[48].mxu0  ;;  %v2619_v6 = vpop.f32.mrb[48].mxu1 }
 0x139   :  { %v1103_v7 = vadd.f32 %v2475_v5, %v3486_v1  ;;  %v1583_v8 = vadd.f32 %v2619_v6, %v3486_v1  ;;  %v1097_v9 = vpop.f32.mrb[49].mxu0  ;;  %v1577_v10 = vpop.f32.mrb[49].mxu1 }
 0x13a   :  { %v1098_v11 = vadd.f32 %v3486_v1, %v1097_v9  ;;  %v1578_v12 = vadd.f32 %v3486_v1, %v1577_v10 }
 0x13b   :  { %1866 = vst.msk [vmem:[%s4432_s3 + $0x188] sm:$0xff] %vm1816_vm1, %v1103_v7  ;;  %1962 = vst.msk [vmem:[%s4432_s3 + $0x488] sm:$0xff] %vm1816_vm1, %v1583_v8 }
 0x13c   :  { %1865 = vst.msk [vmem:[%s4432_s3 + $0x180] sm:$0xff] %vm1816_vm1, %v1098_v11  ;;  %1961 = vst.msk [vmem:[%s4432_s3 + $0x480] sm:$0xff] %vm1816_vm1, %v1578_v12  ;;  %v2478_v13 = vpop.f32.mrb[50].mxu0  ;;  %v2622_v14 = vpop.f32.mrb[50].mxu1 }
 0x13d   :  { %v1113_v15 = vadd.f32 %v2478_v13, %v3486_v1  ;;  %v1593_v16 = vadd.f32 %v2622_v14, %v3486_v1  ;;  %v1107_v17 = vpop.f32.mrb[51].mxu0  ;;  %v1587_v18 = vpop.f32.mrb[51].mxu1 }
 0x13e   :  { %v1108_v19 = vadd.f32 %v3486_v1, %v1107_v17  ;;  %v1588_v20 = vadd.f32 %v3486_v1, %v1587_v18 }
 0x13f   :  { %1868 = vst.msk [vmem:[%s4432_s3 + $0x198] sm:$0xff] %vm1816_vm1, %v1113_v15  ;;  %1964 = vst.msk [vmem:[%s4432_s3 + $0x498] sm:$0xff] %vm1816_vm1, %v1593_v16 }
 0x140   :  { %1867 = vst.msk [vmem:[%s4432_s3 + $0x190] sm:$0xff] %vm1816_vm1, %v1108_v19  ;;  %1963 = vst.msk [vmem:[%s4432_s3 + $0x490] sm:$0xff] %vm1816_vm1, %v1588_v20  ;;  %v2481_v21 = vpop.f32.mrb[52].mxu0  ;;  %v2625_v22 = vpop.f32.mrb[52].mxu1 }
 0x141   :  { %v1123_v23 = vadd.f32 %v2481_v21, %v3486_v1  ;;  %v1603_v24 = vadd.f32 %v2625_v22, %v3486_v1  ;;  %v1117_v25 = vpop.f32.mrb[53].mxu0  ;;  %v1597_v26 = vpop.f32.mrb[53].mxu1 }
 0x142   :  { %v1118_v27 = vadd.f32 %v3486_v1, %v1117_v25  ;;  %v1598_v28 = vadd.f32 %v3486_v1, %v1597_v26 }
 0x143   :  { %1870 = vst.msk [vmem:[%s4432_s3 + $0x1a8] sm:$0xff] %vm1816_vm1, %v1123_v23  ;;  %1966 = vst.msk [vmem:[%s4432_s3 + $0x4a8] sm:$0xff] %vm1816_vm1, %v1603_v24 }
 0x144   :  { %1869 = vst.msk [vmem:[%s4432_s3 + $0x1a0] sm:$0xff] %vm1816_vm1, %v1118_v27  ;;  %1965 = vst.msk [vmem:[%s4432_s3 + $0x4a0] sm:$0xff] %vm1816_vm1, %v1598_v28  ;;  %v2484_v29 = vpop.f32.mrb[54].mxu0  ;;  %v2628_v30 = vpop.f32.mrb[54].mxu1 }
 0x145   :  { %v1133_v31 = vadd.f32 %v2484_v29, %v3486_v1  ;;  %v1613_v32 = vadd.f32 %v2628_v30, %v3486_v1  ;;  %v1127_v33 = vpop.f32.mrb[55].mxu0  ;;  %v1607_v34 = vpop.f32.mrb[55].mxu1 }
 0x146   :  { %v1128_v35 = vadd.f32 %v3486_v1, %v1127_v33  ;;  %v1608_v36 = vadd.f32 %v3486_v1, %v1607_v34 }
 0x147   :  { %1872 = vst.msk [vmem:[%s4432_s3 + $0x1b8] sm:$0xff] %vm1816_vm1, %v1133_v31  ;;  %1968 = vst.msk [vmem:[%s4432_s3 + $0x4b8] sm:$0xff] %vm1816_vm1, %v1613_v32 }
 0x148   :  { %1871 = vst.msk [vmem:[%s4432_s3 + $0x1b0] sm:$0xff] %vm1816_vm1, %v1128_v35  ;;  %1967 = vst.msk [vmem:[%s4432_s3 + $0x4b0] sm:$0xff] %vm1816_vm1, %v1608_v36  ;;  %v2487_v37 = vpop.f32.mrb[56].mxu0  ;;  %v2631_v38 = vpop.f32.mrb[56].mxu1 }
 0x149   :  { %v1143_v39 = vadd.f32 %v2487_v37, %v3486_v1  ;;  %v1623_v40 = vadd.f32 %v2631_v38, %v3486_v1  ;;  %v1137_v41 = vpop.f32.mrb[57].mxu0  ;;  %v1617_v42 = vpop.f32.mrb[57].mxu1 }
 0x14a   :  { %v1138_v43 = vadd.f32 %v3486_v1, %v1137_v41  ;;  %v1618_v44 = vadd.f32 %v3486_v1, %v1617_v42 }
 0x14b   :  { %1874 = vst.msk [vmem:[%s4432_s3 + $0x1c8] sm:$0xff] %vm1816_vm1, %v1143_v39  ;;  %1970 = vst.msk [vmem:[%s4432_s3 + $0x4c8] sm:$0xff] %vm1816_vm1, %v1623_v40 }
 0x14c   :  { %1873 = vst.msk [vmem:[%s4432_s3 + $0x1c0] sm:$0xff] %vm1816_vm1, %v1138_v43  ;;  %1969 = vst.msk [vmem:[%s4432_s3 + $0x4c0] sm:$0xff] %vm1816_vm1, %v1618_v44  ;;  %v2490_v45 = vpop.f32.mrb[58].mxu0  ;;  %v2634_v46 = vpop.f32.mrb[58].mxu1 }
 0x14d   :  { %v1153_v47 = vadd.f32 %v2490_v45, %v3486_v1  ;;  %v1633_v48 = vadd.f32 %v2634_v46, %v3486_v1  ;;  %v1147_v49 = vpop.f32.mrb[59].mxu0  ;;  %v1627_v50 = vpop.f32.mrb[59].mxu1 }
 0x14e   :  { %v1148_v51 = vadd.f32 %v3486_v1, %v1147_v49  ;;  %v1628_v52 = vadd.f32 %v3486_v1, %v1627_v50 }
 0x14f   :  { %1876 = vst.msk [vmem:[%s4432_s3 + $0x1d8] sm:$0xff] %vm1816_vm1, %v1153_v47  ;;  %1972 = vst.msk [vmem:[%s4432_s3 + $0x4d8] sm:$0xff] %vm1816_vm1, %v1633_v48 }
 0x150   :  { %1875 = vst.msk [vmem:[%s4432_s3 + $0x1d0] sm:$0xff] %vm1816_vm1, %v1148_v51  ;;  %1971 = vst.msk [vmem:[%s4432_s3 + $0x4d0] sm:$0xff] %vm1816_vm1, %v1628_v52  ;;  %v2493_v53 = vpop.f32.mrb[60].mxu0  ;;  %v2637_v54 = vpop.f32.mrb[60].mxu1 }
 0x151   :  { %v1163_v55 = vadd.f32 %v2493_v53, %v3486_v1  ;;  %v1643_v56 = vadd.f32 %v2637_v54, %v3486_v1  ;;  %v1157_v57 = vpop.f32.mrb[61].mxu0  ;;  %v1637_v58 = vpop.f32.mrb[61].mxu1 }
 0x152   :  { %v1158_v59 = vadd.f32 %v3486_v1, %v1157_v57  ;;  %v1638_v60 = vadd.f32 %v3486_v1, %v1637_v58 }
 0x153   :  { %1878 = vst.msk [vmem:[%s4432_s3 + $0x1e8] sm:$0xff] %vm1816_vm1, %v1163_v55  ;;  %1974 = vst.msk [vmem:[%s4432_s3 + $0x4e8] sm:$0xff] %vm1816_vm1, %v1643_v56 }
 0x154   :  { %1877 = vst.msk [vmem:[%s4432_s3 + $0x1e0] sm:$0xff] %vm1816_vm1, %v1158_v59  ;;  %1973 = vst.msk [vmem:[%s4432_s3 + $0x4e0] sm:$0xff] %vm1816_vm1, %v1638_v60  ;;  %v2496_v61 = vpop.f32.mrb[62].mxu0  ;;  %v2640_v62 = vpop.f32.mrb[62].mxu1 }
 0x155   :  { %v1173_v63 = vadd.f32 %v2496_v61, %v3486_v1  ;;  %v1653_v0 = vadd.f32 %v2640_v62, %v3486_v1  ;;  %v1167_v2 = vpop.f32.mrb[63].mxu0  ;;  %v1647_v3 = vpop.f32.mrb[63].mxu1 }
 0x156   :  { %v1168_v4 = vadd.f32 %v3486_v1, %v1167_v2  ;;  %v1648_v5 = vadd.f32 %v3486_v1, %v1647_v3 }
 0x157   :  { %1880 = vst.msk [vmem:[%s4432_s3 + $0x1f8] sm:$0xff] %vm1816_vm1, %v1173_v63  ;;  %1976 = vst.msk [vmem:[%s4432_s3 + $0x4f8] sm:$0xff] %vm1816_vm1, %v1653_v0 }
 0x158   :  { %1879 = vst.msk [vmem:[%s4432_s3 + $0x1f0] sm:$0xff] %vm1816_vm1, %v1168_v4  ;;  %1975 = vst.msk [vmem:[%s4432_s3 + $0x4f0] sm:$0xff] %vm1816_vm1, %v1648_v5  ;;  %v2499_v6 = vpop.f32.mrb[64].mxu0  ;;  %v2643_v7 = vpop.f32.mrb[64].mxu1 }
 0x159   :  { %v1183_v8 = vadd.f32 %v2499_v6, %v3486_v1  ;;  %v1663_v9 = vadd.f32 %v2643_v7, %v3486_v1  ;;  %v1177_v10 = vpop.f32.mrb[65].mxu0  ;;  %v1657_v11 = vpop.f32.mrb[65].mxu1 }
 0x15a   :  { %v1178_v12 = vadd.f32 %v3486_v1, %v1177_v10  ;;  %v1658_v13 = vadd.f32 %v3486_v1, %v1657_v11 }
 0x15b   :  { %1882 = vst.msk [vmem:[%s4432_s3 + $0x208] sm:$0xff] %vm1816_vm1, %v1183_v8  ;;  %1978 = vst.msk [vmem:[%s4432_s3 + $0x508] sm:$0xff] %vm1816_vm1, %v1663_v9 }
 0x15c   :  { %1881 = vst.msk [vmem:[%s4432_s3 + $0x200] sm:$0xff] %vm1816_vm1, %v1178_v12  ;;  %1977 = vst.msk [vmem:[%s4432_s3 + $0x500] sm:$0xff] %vm1816_vm1, %v1658_v13  ;;  %v2502_v14 = vpop.f32.mrb[66].mxu0  ;;  %v2646_v15 = vpop.f32.mrb[66].mxu1 }
 0x15d   :  { %v1193_v16 = vadd.f32 %v2502_v14, %v3486_v1  ;;  %v1673_v17 = vadd.f32 %v2646_v15, %v3486_v1  ;;  %v1187_v18 = vpop.f32.mrb[67].mxu0  ;;  %v1667_v19 = vpop.f32.mrb[67].mxu1 }
 0x15e   :  { %v1188_v20 = vadd.f32 %v3486_v1, %v1187_v18  ;;  %v1668_v21 = vadd.f32 %v3486_v1, %v1667_v19 }
 0x15f   :  { %1884 = vst.msk [vmem:[%s4432_s3 + $0x218] sm:$0xff] %vm1816_vm1, %v1193_v16  ;;  %1980 = vst.msk [vmem:[%s4432_s3 + $0x518] sm:$0xff] %vm1816_vm1, %v1673_v17 }
 0x160   :  { %1883 = vst.msk [vmem:[%s4432_s3 + $0x210] sm:$0xff] %vm1816_vm1, %v1188_v20  ;;  %1979 = vst.msk [vmem:[%s4432_s3 + $0x510] sm:$0xff] %vm1816_vm1, %v1668_v21  ;;  %v2505_v22 = vpop.f32.mrb[68].mxu0  ;;  %v2649_v23 = vpop.f32.mrb[68].mxu1 }
 0x161   :  { %v1203_v24 = vadd.f32 %v2505_v22, %v3486_v1  ;;  %v1683_v25 = vadd.f32 %v2649_v23, %v3486_v1  ;;  %v1197_v26 = vpop.f32.mrb[69].mxu0  ;;  %v1677_v27 = vpop.f32.mrb[69].mxu1 }
 0x162   :  { %v1198_v28 = vadd.f32 %v3486_v1, %v1197_v26  ;;  %v1678_v29 = vadd.f32 %v3486_v1, %v1677_v27 }
 0x163   :  { %1886 = vst.msk [vmem:[%s4432_s3 + $0x228] sm:$0xff] %vm1816_vm1, %v1203_v24  ;;  %1982 = vst.msk [vmem:[%s4432_s3 + $0x528] sm:$0xff] %vm1816_vm1, %v1683_v25 }
 0x164   :  { %1885 = vst.msk [vmem:[%s4432_s3 + $0x220] sm:$0xff] %vm1816_vm1, %v1198_v28  ;;  %1981 = vst.msk [vmem:[%s4432_s3 + $0x520] sm:$0xff] %vm1816_vm1, %v1678_v29  ;;  %v2508_v30 = vpop.f32.mrb[70].mxu0  ;;  %v2652_v31 = vpop.f32.mrb[70].mxu1  ;;  %v2691_v29 = vld [vmem:[%s4431_s2] ss:$0 sm:$0xff] }
 0x165   :  { %v1213_v32 = vadd.f32 %v2508_v30, %v3486_v1  ;;  %v1693_v33 = vadd.f32 %v2652_v31, %v3486_v1  ;;  %v1207_v34 = vpop.f32.mrb[71].mxu0  ;;  %v1687_v35 = vpop.f32.mrb[71].mxu1 }
 0x166   :  { %v1208_v36 = vadd.f32 %v3486_v1, %v1207_v34  ;;  %v1688_v37 = vadd.f32 %v3486_v1, %v1687_v35 }
 0x167   :  { %1888 = vst.msk [vmem:[%s4432_s3 + $0x238] sm:$0xff] %vm1816_vm1, %v1213_v32  ;;  %1984 = vst.msk [vmem:[%s4432_s3 + $0x538] sm:$0xff] %vm1816_vm1, %v1693_v33 }
 0x168   :  { %1887 = vst.msk [vmem:[%s4432_s3 + $0x230] sm:$0xff] %vm1816_vm1, %v1208_v36  ;;  %1983 = vst.msk [vmem:[%s4432_s3 + $0x530] sm:$0xff] %vm1816_vm1, %v1688_v37  ;;  %v2511_v38 = vpop.f32.mrb[72].mxu0  ;;  %v2655_v39 = vpop.f32.mrb[72].mxu1 }
 0x169   :  { %v1223_v40 = vadd.f32 %v2511_v38, %v3486_v1  ;;  %v1703_v41 = vadd.f32 %v2655_v39, %v3486_v1  ;;  %v1217_v42 = vpop.f32.mrb[73].mxu0  ;;  %v1697_v43 = vpop.f32.mrb[73].mxu1 }
 0x16a   :  { %v1218_v44 = vadd.f32 %v3486_v1, %v1217_v42  ;;  %v1698_v45 = vadd.f32 %v3486_v1, %v1697_v43 }
 0x16b   :  { %1890 = vst.msk [vmem:[%s4432_s3 + $0x248] sm:$0xff] %vm1816_vm1, %v1223_v40  ;;  %1986 = vst.msk [vmem:[%s4432_s3 + $0x548] sm:$0xff] %vm1816_vm1, %v1703_v41 }
 0x16c   :  { %1889 = vst.msk [vmem:[%s4432_s3 + $0x240] sm:$0xff] %vm1816_vm1, %v1218_v44  ;;  %1985 = vst.msk [vmem:[%s4432_s3 + $0x540] sm:$0xff] %vm1816_vm1, %v1698_v45  ;;  %v2514_v46 = vpop.f32.mrb[74].mxu0  ;;  %v2658_v47 = vpop.f32.mrb[74].mxu1 }
 0x16d   :  { %v1233_v48 = vadd.f32 %v2514_v46, %v3486_v1  ;;  %v1713_v49 = vadd.f32 %v2658_v47, %v3486_v1  ;;  %v1227_v50 = vpop.f32.mrb[75].mxu0  ;;  %v1707_v51 = vpop.f32.mrb[75].mxu1 }
 0x16e   :  { %v1228_v52 = vadd.f32 %v3486_v1, %v1227_v50  ;;  %v1708_v53 = vadd.f32 %v3486_v1, %v1707_v51 }
 0x16f   :  { %1892 = vst.msk [vmem:[%s4432_s3 + $0x258] sm:$0xff] %vm1816_vm1, %v1233_v48  ;;  %1988 = vst.msk [vmem:[%s4432_s3 + $0x558] sm:$0xff] %vm1816_vm1, %v1713_v49 }
 0x170   :  { %1891 = vst.msk [vmem:[%s4432_s3 + $0x250] sm:$0xff] %vm1816_vm1, %v1228_v52  ;;  %1987 = vst.msk [vmem:[%s4432_s3 + $0x550] sm:$0xff] %vm1816_vm1, %v1708_v53  ;;  %v2517_v54 = vpop.f32.mrb[76].mxu0  ;;  %v2661_v55 = vpop.f32.mrb[76].mxu1 }
 0x171   :  { %v1243_v56 = vadd.f32 %v2517_v54, %v3486_v1  ;;  %v1723_v57 = vadd.f32 %v2661_v55, %v3486_v1  ;;  %v1237_v58 = vpop.f32.mrb[77].mxu0  ;;  %v1717_v59 = vpop.f32.mrb[77].mxu1 }
 0x172   :  { %v1238_v60 = vadd.f32 %v3486_v1, %v1237_v58  ;;  %v1718_v61 = vadd.f32 %v3486_v1, %v1717_v59 }
 0x173   :  { %1894 = vst.msk [vmem:[%s4432_s3 + $0x268] sm:$0xff] %vm1816_vm1, %v1243_v56  ;;  %1990 = vst.msk [vmem:[%s4432_s3 + $0x568] sm:$0xff] %vm1816_vm1, %v1723_v57 }
 0x174   :  { %1893 = vst.msk [vmem:[%s4432_s3 + $0x260] sm:$0xff] %vm1816_vm1, %v1238_v60  ;;  %1989 = vst.msk [vmem:[%s4432_s3 + $0x560] sm:$0xff] %vm1816_vm1, %v1718_v61  ;;  %v2520_v62 = vpop.f32.mrb[78].mxu0  ;;  %v2664_v63 = vpop.f32.mrb[78].mxu1 }
 0x175   :  { %v1253_v0 = vadd.f32 %v2520_v62, %v3486_v1  ;;  %v1733_v2 = vadd.f32 %v2664_v63, %v3486_v1  ;;  %v1247_v3 = vpop.f32.mrb[79].mxu0  ;;  %v1727_v4 = vpop.f32.mrb[79].mxu1 }
 0x176   :  { %v1248_v5 = vadd.f32 %v3486_v1, %v1247_v3  ;;  %v1728_v6 = vadd.f32 %v3486_v1, %v1727_v4 }
 0x177   :  { %1896 = vst.msk [vmem:[%s4432_s3 + $0x278] sm:$0xff] %vm1816_vm1, %v1253_v0  ;;  %1992 = vst.msk [vmem:[%s4432_s3 + $0x578] sm:$0xff] %vm1816_vm1, %v1733_v2 }
 0x178   :  { %1895 = vst.msk [vmem:[%s4432_s3 + $0x270] sm:$0xff] %vm1816_vm1, %v1248_v5  ;;  %1991 = vst.msk [vmem:[%s4432_s3 + $0x570] sm:$0xff] %vm1816_vm1, %v1728_v6  ;;  %v2523_v7 = vpop.f32.mrb[80].mxu0  ;;  %v2667_v8 = vpop.f32.mrb[80].mxu1 }
 0x179   :  { %v1263_v9 = vadd.f32 %v2523_v7, %v3486_v1  ;;  %v1743_v10 = vadd.f32 %v2667_v8, %v3486_v1  ;;  %v1257_v11 = vpop.f32.mrb[81].mxu0  ;;  %v1737_v12 = vpop.f32.mrb[81].mxu1 }
 0x17a   :  { %v1258_v13 = vadd.f32 %v3486_v1, %v1257_v11  ;;  %v1738_v14 = vadd.f32 %v3486_v1, %v1737_v12 }
 0x17b   :  { %1898 = vst.msk [vmem:[%s4432_s3 + $0x288] sm:$0xff] %vm1816_vm1, %v1263_v9  ;;  %1994 = vst.msk [vmem:[%s4432_s3 + $0x588] sm:$0xff] %vm1816_vm1, %v1743_v10 }
 0x17c   :  { %1897 = vst.msk [vmem:[%s4432_s3 + $0x280] sm:$0xff] %vm1816_vm1, %v1258_v13  ;;  %1993 = vst.msk [vmem:[%s4432_s3 + $0x580] sm:$0xff] %vm1816_vm1, %v1738_v14  ;;  %v2526_v15 = vpop.f32.mrb[82].mxu0  ;;  %v2670_v16 = vpop.f32.mrb[82].mxu1 }
 0x17d   :  { %v1273_v17 = vadd.f32 %v2526_v15, %v3486_v1  ;;  %v1753_v18 = vadd.f32 %v2670_v16, %v3486_v1  ;;  %v1267_v19 = vpop.f32.mrb[83].mxu0  ;;  %v1747_v20 = vpop.f32.mrb[83].mxu1 }
 0x17e   :  { %v1268_v21 = vadd.f32 %v3486_v1, %v1267_v19  ;;  %v1748_v22 = vadd.f32 %v3486_v1, %v1747_v20 }
 0x17f   :  { %1900 = vst.msk [vmem:[%s4432_s3 + $0x298] sm:$0xff] %vm1816_vm1, %v1273_v17  ;;  %1996 = vst.msk [vmem:[%s4432_s3 + $0x598] sm:$0xff] %vm1816_vm1, %v1753_v18 }
 0x180   :  { %1899 = vst.msk [vmem:[%s4432_s3 + $0x290] sm:$0xff] %vm1816_vm1, %v1268_v21  ;;  %1995 = vst.msk [vmem:[%s4432_s3 + $0x590] sm:$0xff] %vm1816_vm1, %v1748_v22  ;;  %v2529_v23 = vpop.f32.mrb[84].mxu0  ;;  %v2673_v24 = vpop.f32.mrb[84].mxu1 }
 0x181   :  { %v1283_v25 = vadd.f32 %v2529_v23, %v3486_v1  ;;  %v1763_v26 = vadd.f32 %v2673_v24, %v3486_v1  ;;  %v1277_v27 = vpop.f32.mrb[85].mxu0  ;;  %v1757_v28 = vpop.f32.mrb[85].mxu1 }
 0x182   :  { %v1278_v30 = vadd.f32 %v2691_v29, %v1277_v27  ;;  %v1758_v31 = vadd.f32 %v2691_v29, %v1757_v28 }
 0x183   :  { %1902 = vst.msk [vmem:[%s4432_s3 + $0x2a8] sm:$0xff] %vm1816_vm1, %v1283_v25  ;;  %1998 = vst.msk [vmem:[%s4432_s3 + $0x5a8] sm:$0xff] %vm1816_vm1, %v1763_v26 }
 0x184   :  { %1901 = vst.msk [vmem:[%s4432_s3 + $0x2a0] sm:$0xff] %vm1816_vm1, %v1278_v30  ;;  %1997 = vst.msk [vmem:[%s4432_s3 + $0x5a0] sm:$0xff] %vm1816_vm1, %v1758_v31  ;;  %v2532_v1 = vpop.f32.mrb[86].mxu0  ;;  %v2676_v32 = vpop.f32.mrb[86].mxu1 }
 0x185   :  { %v1293_v33 = vadd.f32 %v2691_v29, %v2532_v1  ;;  %v1773_v34 = vadd.f32 %v2691_v29, %v2676_v32  ;;  %v1287_v35 = vpop.f32.mrb[87].mxu0  ;;  %v1767_v36 = vpop.f32.mrb[87].mxu1 }
 0x186   :  { %v1288_v37 = vadd.f32 %v2691_v29, %v1287_v35  ;;  %v1768_v38 = vadd.f32 %v2691_v29, %v1767_v36 }
 0x187   :  { %1904 = vst.msk [vmem:[%s4432_s3 + $0x2b8] sm:$0xff] %vm1816_vm1, %v1293_v33  ;;  %2000 = vst.msk [vmem:[%s4432_s3 + $0x5b8] sm:$0xff] %vm1816_vm1, %v1773_v34 }
 0x188   :  { %1903 = vst.msk [vmem:[%s4432_s3 + $0x2b0] sm:$0xff] %vm1816_vm1, %v1288_v37  ;;  %1999 = vst.msk [vmem:[%s4432_s3 + $0x5b0] sm:$0xff] %vm1816_vm1, %v1768_v38  ;;  %v2535_v39 = vpop.f32.mrb[88].mxu0  ;;  %v2679_v40 = vpop.f32.mrb[88].mxu1 }
 0x189   :  { %v1303_v41 = vadd.f32 %v2691_v29, %v2535_v39  ;;  %v1783_v42 = vadd.f32 %v2691_v29, %v2679_v40  ;;  %v1297_v43 = vpop.f32.mrb[89].mxu0  ;;  %v1777_v44 = vpop.f32.mrb[89].mxu1 }
 0x18a   :  { %v1298_v45 = vadd.f32 %v2691_v29, %v1297_v43  ;;  %v1778_v46 = vadd.f32 %v2691_v29, %v1777_v44 }
 0x18b   :  { %1906 = vst.msk [vmem:[%s4432_s3 + $0x2c8] sm:$0xff] %vm1816_vm1, %v1303_v41  ;;  %2002 = vst.msk [vmem:[%s4432_s3 + $0x5c8] sm:$0xff] %vm1816_vm1, %v1783_v42 }
 0x18c   :  { %1905 = vst.msk [vmem:[%s4432_s3 + $0x2c0] sm:$0xff] %vm1816_vm1, %v1298_v45  ;;  %2001 = vst.msk [vmem:[%s4432_s3 + $0x5c0] sm:$0xff] %vm1816_vm1, %v1778_v46  ;;  %v2538_v47 = vpop.f32.mrb[90].mxu0  ;;  %v2682_v48 = vpop.f32.mrb[90].mxu1 }
 0x18d   :  { %v1313_v49 = vadd.f32 %v2691_v29, %v2538_v47  ;;  %v1793_v50 = vadd.f32 %v2691_v29, %v2682_v48  ;;  %v1307_v51 = vpop.f32.mrb[91].mxu0  ;;  %v1787_v52 = vpop.f32.mrb[91].mxu1 }
 0x18e   :  { %v1308_v53 = vadd.f32 %v2691_v29, %v1307_v51  ;;  %v1788_v54 = vadd.f32 %v2691_v29, %v1787_v52 }
 0x18f   :  { %1908 = vst.msk [vmem:[%s4432_s3 + $0x2d8] sm:$0xff] %vm1816_vm1, %v1313_v49  ;;  %2004 = vst.msk [vmem:[%s4432_s3 + $0x5d8] sm:$0xff] %vm1816_vm1, %v1793_v50 }
 0x190   :  { %1907 = vst.msk [vmem:[%s4432_s3 + $0x2d0] sm:$0xff] %vm1816_vm1, %v1308_v53  ;;  %2003 = vst.msk [vmem:[%s4432_s3 + $0x5d0] sm:$0xff] %vm1816_vm1, %v1788_v54  ;;  %v2541_v55 = vpop.f32.mrb[92].mxu0  ;;  %v2685_v56 = vpop.f32.mrb[92].mxu1 }
 0x191   :  { %v1323_v57 = vadd.f32 %v2691_v29, %v2541_v55  ;;  %v1803_v58 = vadd.f32 %v2691_v29, %v2685_v56  ;;  %v1317_v59 = vpop.f32.mrb[93].mxu0  ;;  %v1797_v60 = vpop.f32.mrb[93].mxu1 }
 0x192   :  { %v1318_v61 = vadd.f32 %v2691_v29, %v1317_v59  ;;  %v1798_v62 = vadd.f32 %v2691_v29, %v1797_v60 }
 0x193   :  { %1910 = vst.msk [vmem:[%s4432_s3 + $0x2e8] sm:$0xff] %vm1816_vm1, %v1323_v57  ;;  %2006 = vst.msk [vmem:[%s4432_s3 + $0x5e8] sm:$0xff] %vm1816_vm1, %v1803_v58 }
 0x194   :  { %1909 = vst.msk [vmem:[%s4432_s3 + $0x2e0] sm:$0xff] %vm1816_vm1, %v1318_v61  ;;  %2005 = vst.msk [vmem:[%s4432_s3 + $0x5e0] sm:$0xff] %vm1816_vm1, %v1798_v62  ;;  %v2544_v63 = vpop.f32.mrb[94].mxu0  ;;  %v2688_v0 = vpop.f32.mrb[94].mxu1 }
 0x195   :  { %v1333_v2 = vadd.f32 %v2691_v29, %v2544_v63  ;;  %v1813_v3 = vadd.f32 %v2691_v29, %v2688_v0  ;;  %v1327_v4 = vpop.f32.mrb[95].mxu0  ;;  %v1807_v5 = vpop.f32.mrb[95].mxu1 }
 0x196   :  { %v1328_v6 = vadd.f32 %v2691_v29, %v1327_v4  ;;  %v1808_v7 = vadd.f32 %v2691_v29, %v1807_v5 }
 0x197   :  { %1912 = vst.msk [vmem:[%s4432_s3 + $0x2f8] sm:$0xff] %vm1816_vm1, %v1333_v2  ;;  %2008 = vst.msk [vmem:[%s4432_s3 + $0x5f8] sm:$0xff] %vm1816_vm1, %v1813_v3 }
 0x198   :  { %1911 = vst.msk [vmem:[%s4432_s3 + $0x2f0] sm:$0xff] %vm1816_vm1, %v1328_v6  ;;  %2007 = vst.msk [vmem:[%s4432_s3 + $0x5f0] sm:$0xff] %vm1816_vm1, %v1808_v7 }

// kernel: multi_view_attention_forward.3
= control target key start
LH: loop header
LB: loop body
LE: loop exit
PB: predicated region body
PF: predicated region fallthrough
CT: control target
= control target key end

     0   :  { %vm65_vm0 = vcmask 261120   ;;  %v367_v3 = vmov 0   ;;  %vm209_vm1 = vcmask 1041409   ;;  %vm211_vm2 = vcmask 1042434   ;;  %s557_s1 = inlined_call_operand.vmem [shape: f32[32,128], index: 1, kind: input, shape index: {}]   ;;  %s558_s3 = inlined_call_operand.vmem [shape: f32[32,32], index: 3, kind: input, shape index: {}]   ;;  %s559_s4 = inlined_call_operand.vmem [shape: f32[32,1], index: 4, kind: input, shape index: {}]   ;;  %s560_s0 = inlined_call_operand.vmem [shape: f32[3,32,128], index: 0, kind: input, shape index: {}]   ;;  %s561_s2 = inlined_call_operand.vmem [shape: f32[3,128], index: 2, kind: input, shape index: {}]   ;;  %s562_s5 = inlined_call_operand.vmem [shape: f32[32,128], index: 5, kind: output, shape index: {}]  }
   0x1   :  { %v402_v0 = vld [vmem:[%s557_s1] sm:$0xff]  ;;  %v407_v1 = vld [vmem:[%s557_s1 + $0x8] sm:$0xff]  ;;  %v412_v2 = vld [vmem:[%s557_s1 + $0x10] sm:$0xff]  ;;  %361 = vset.pattern.permute.xlu0 %v367_v3  ;;  %362 = vset.pattern.permute.xlu1 %v367_v3  ;;  %vm215_vm4 = vcmask 1042432  }
   0x2   :  { %v347_v4 = vpack.c.bf16 %v407_v1, %v402_v0  ;;  %v419_v5 = vld [vmem:[%s557_s1 + $0x18] sm:$0xff]  ;;  %v37_v6 = vld [vmem:[%s558_s3] sm:$0xff]  ;;  %v39_v7 = vld [vmem:[%s558_s3 + $0x10] sm:$0xff] }
   0x3   :  { %v351_v8 = vpack.c.bf16 %v419_v5, %v412_v2  ;;  %341 = vmatprep.mubr.msk.f32.mxu0 %vm65_vm0, %v37_v6  ;;  %344 = vmatprep.mubr.msk.f32.mxu1 %vm65_vm0, %v39_v7  ;;  %v41_v9 = vld [vmem:[%s559_s4] sm:$0xff]  ;;  %v43_v10 = vld [vmem:[%s559_s4 + $0x10] sm:$0xff]  ;;  %v42_v11 = vld [vmem:[%s559_s4 + $0x8] sm:$0xff] }
   0x4   :  { %348 = vmatprep.subr.bf16.mxu0 %v347_v4  ;;  %355 = vmatprep.subr.bf16.mxu1 %v347_v4  ;;  %v44_v12 = vld [vmem:[%s559_s4 + $0x18] sm:$0xff]  ;;  %v38_v13 = vld [vmem:[%s558_s3 + $0x8] sm:$0xff]  ;;  %v469_v25 = vld [vmem:[%s560_s0] sm:$0xff] }
   0x5   :  { %350 = vmatpush3.bf16.msra.mxu0 %v347_v4  ;;  %357 = vmatpush3.bf16.msra.mxu1 %v347_v4  ;;  %v40_v14 = vld [vmem:[%s558_s3 + $0x18] sm:$0xff]  ;;  %v454_v19 = vld [vmem:[%s560_s0 + $0x8] sm:$0xff]  ;;  %v474_v26 = vld [vmem:[%s560_s0 + $0x20] sm:$0xff] }
   0x6   :  { %352 = vmatprep.subr.bf16.mxu0 %v351_v8  ;;  %356 = vmatprep.subr.bf16.mxu1 %v351_v8  ;;  %v459_v20 = vld [vmem:[%s560_s0 + $0x28] sm:$0xff]  ;;  %v479_v29 = vld [vmem:[%s560_s0 + $0x40] sm:$0xff]  ;;  %v487_v35 = vld [vmem:[%s560_s0 + $0x10] sm:$0xff] }
   0x7   :  { %47 = vperm.xlu0 %361, %v41_v9   ;;  %57 = vperm.xlu1 %362, %v43_v10   ;;  %v464_v21 = vld [vmem:[%s560_s0 + $0x48] sm:$0xff]  ;;  %v492_v36 = vld [vmem:[%s560_s0 + $0x30] sm:$0xff]  ;;  %v504_v41 = vld [vmem:[%s560_s0 + $0x18] sm:$0xff] }
   0x8   :  { %v499_v40 = vld [vmem:[%s560_s0 + $0x50] sm:$0xff]  ;;  %v509_v42 = vld [vmem:[%s560_s0 + $0x38] sm:$0xff] }
   0x9   :  { %354 = vmatpush3.bf16.msra.mxu0 %v351_v8  ;;  %358 = vmatpush3.bf16.msra.mxu1 %v351_v8  ;;  %v515_v44 = vld [vmem:[%s560_s0 + $0x58] sm:$0xff] }
   0xb   :  { %52 = vperm.xlu0 %361, %v42_v11   ;;  %62 = vperm.xlu1 %362, %v44_v12  }
   0xc   :  { %342 = vmatmul.mubr.msk.f32.vlgmr.msra.gmra.mrb[0].mxu0 %vm65_vm0, %v38_v13  ;;  %345 = vmatmul.mubr.msk.f32.vlgmr.msra.gmra.mrb[0].mxu1 %vm65_vm0, %v40_v14 }
  0x86   :  { %v48_v15 = vpop.permute.xlu0 %47  ;;  %v58_v16 = vpop.permute.xlu1 %57 }
  0x8a   :  { %v53_v17 = vpop.permute.xlu0 %52  ;;  %v63_v18 = vpop.permute.xlu1 %62 }
  0xdf   :  { %v343_v22 = vpop.f32.mrb[0].mxu0  ;;  %v346_v23 = vpop.f32.mrb[0].mxu1 }
  0xe0   :  { %v150_v24 = vadd.f32 %v343_v22, %v53_v17  ;;  %v144_v27 = vpop.f32.mrb[1].mxu0  ;;  %v154_v28 = vpop.f32.mrb[1].mxu1  ;;  %v160_v37 = vadd.f32 %v346_v23, %v63_v18 }
  0xe1   :  { %v145_v30 = vadd.f32 %v144_v27, %v48_v15  ;;  %v155_v31 = vadd.f32 %v154_v28, %v58_v16  ;;  %v32_v15 = vld [vmem:[%s561_s2] sm:$0x7] }
  0xe2   :  { %v164_v32 = vmul.f32 %v150_v24, %v454_v19  ;;  %v168_v33 = vmul.f32 %v150_v24, %v459_v20  ;;  %v172_v34 = vmul.f32 %v150_v24, %v464_v21  ;;  %v166_v51 = vmul.f32 %v160_v37, %v504_v41 }
  0xe3   :  { %v163_v38 = vmul.f32 %v145_v30, %v469_v25  ;;  %v167_v39 = vmul.f32 %v145_v30, %v474_v26  ;;  %v171_v43 = vmul.f32 %v145_v30, %v479_v29  ;;  %v165_v47 = vmul.f32 %v155_v31, %v487_v35 }
  0xe4   :  { %v169_v48 = vmul.f32 %v155_v31, %v492_v36  ;;  %v173_v50 = vmul.f32 %v155_v31, %v499_v40  ;;  %v170_v52 = vmul.f32 %v160_v37, %v509_v42  ;;  %v174_v55 = vmul.f32 %v160_v37, %v515_v44 }
  0xe5   :  { %v175_v45 = vadd.f32 %v164_v32, %v163_v38  ;;  %v184_v46 = vadd.f32 %v168_v33, %v167_v39  ;;  %v193_v49 = vadd.f32 %v172_v34, %v171_v43  ;;  %vm205_vm3 = vcmp.gt.f32.partialorder %v32_v15, 0.0 }
  0xe7   :  { %v176_v53 = vadd.f32 %v175_v45, %v165_v47  ;;  %v185_v54 = vadd.f32 %v184_v46, %v169_v48  ;;  %v194_v56 = vadd.f32 %v193_v49, %v173_v50 }
  0xe9   :  { %v177_v57 = vadd.f32 %v176_v53, %v166_v51  ;;  %v186_v58 = vadd.f32 %v185_v54, %v170_v52  ;;  %v195_v59 = vadd.f32 %v194_v56, %v174_v55  ;;  %v295_v53 = vsel %vm215_vm4, %v32_v15, -inf }
  0xea   :  { %v296_v55 = vrot.slane %v295_v53, 4  ;;  %v368_v56 = vmov 1966171168  }
  0xeb   :  { %v178_v60 = vrot.slane %v177_v57, 4  ;;  %v187_v61 = vrot.slane %v186_v58, 4  ;;  %v196_v62 = vrot.slane %v195_v59, 4 }
  0xed   :  { %v179_v63 = vadd.f32 %v178_v60, %v177_v57  ;;  %v188_v3 = vadd.f32 %v187_v61, %v186_v58  ;;  %v197_v4 = vadd.f32 %v196_v62, %v195_v59  ;;  %v238_v57 = vunpack.c.l.s4 %v368_v56 }
  0xee   :  { %v240_v58 = vlaneseq  ;;  %v297_v59 = vmax.f32 %v295_v53, %v296_v55 }
  0xef   :  { %v180_v6 = vrot.slane %v179_v63, 2  ;;  %v189_v7 = vrot.slane %v188_v3, 2  ;;  %v198_v8 = vrot.slane %v197_v4, 2  ;;  %v239_v60 = vunpack.c.0.s8 %v238_v57 }
  0xf0   :  { %v241_v61 = vshrl.u32 %v240_v58, 7  ;;  %v298_v62 = vrot.slane %v297_v59, 2 }
  0xf1   :  { %v181_v9 = vadd.f32 %v180_v6, %v179_v63  ;;  %v190_v10 = vadd.f32 %v189_v7, %v188_v3  ;;  %v199_v11 = vadd.f32 %v198_v8, %v197_v4 }
  0xf2   :  { %v242_v63 = vsub.s32 %v239_v60, %v241_v61  ;;  %v299_v6 = vmax.f32 %v297_v59, %v298_v62  ;;  %v262_v8 = vsub.s32 0, %v241_v61 }
  0xf3   :  { %v182_v12 = vrot.slane %v181_v9, 1  ;;  %v191_v13 = vrot.slane %v190_v10, 1  ;;  %v200_v14 = vrot.slane %v199_v11, 1 }
  0xf5   :  { %v183_v16 = vadd.f32 %v182_v12, %v181_v9  ;;  %v192_v17 = vadd.f32 %v191_v13, %v190_v10  ;;  %v201_v18 = vadd.f32 %v200_v14, %v199_v11  ;;  %v300_v11 = vrot.slane %v299_v6, 1 }
  0xf7   :  { %v202_v22 = vmul.f32 0.17677669, %v183_v16  ;;  %v203_v23 = vmul.f32 0.17677669, %v192_v17  ;;  %v204_v24 = vmul.f32 0.17677669, %v201_v18  ;;  %v301_v17 = vmax.f32 %v299_v6, %v300_v11 }
  0xf9   :  { %v210_v27 = vsel %vm209_vm1, %v203_v23, %v202_v22  ;;  %vm302_vm5 = vcmp.gt.f32.partialorder %v301_v17, 0.0 }
  0xfa   :  { %v212_v28 = vsel %vm211_vm2, %v204_v24, %v210_v27 }
  0xfb   :  { %v214_v30 = vsel %vm205_vm3, %v212_v28, -10000.0 }
  0xfc   :  { %v216_v31 = vsel %vm215_vm4, %v214_v30, -inf }
  0xfd   :  { %v217_v32 = vrot.slane %v216_v31, 4 }
  0xff   :  { %v218_v33 = vmax.f32 %v216_v31, %v217_v32 }
 0x101   :  { %v219_v34 = vrot.slane %v218_v33, 2 }
 0x103   :  { %v220_v37 = vmax.f32 %v218_v33, %v219_v34 }
 0x105   :  { %v221_v38 = vrot.slane %v220_v37, 1 }
 0x107   :  { %v222_v39 = vmax.f32 %v220_v37, %v221_v38 }
 0x109   :  { %v223_v43 = vsub.f32 %v214_v30, %v222_v39 }
 0x10b   :  { %v224_v45 = vmul.f32 1.442695, %v223_v43 }
 0x10d   :  { %363 = vpow2.f32 %v224_v45 }
 0x117   :  { %v364_v46 = vpop.eup %363 }
 0x118   :  { %v226_v47 = vsel %vm215_vm4, %v364_v46, 0.0 }
 0x119   :  { %v227_v48 = vrot.slane %v226_v47, 4 }
 0x11b   :  { %v228_v49 = vadd.f32 %v227_v48, %v226_v47 }
 0x11d   :  { %v229_v50 = vrot.slane %v228_v49, 2 }
 0x11f   :  { %v230_v51 = vadd.f32 %v229_v50, %v228_v49 }
 0x121   :  { %v231_v52 = vrot.slane %v230_v51, 1 }
 0x123   :  { %v232_v54 = vadd.f32 %v231_v52, %v230_v51 }
 0x125   :  { %365 = vrcp.f32 %v232_v54 }
 0x12f   :  { %v366_v3 = vpop.eup %365 }
 0x130   :  { %v235_v4 = vmul.f32 %v366_v3, %v364_v46 }
 0x132   :  { %v243_v7 = vrot.slane %v235_v4, %v242_v63 }
 0x134   :  { %v244_v9 = vcombine.high %v243_v7, %v243_v7  ;;  %v251_v10 = vrot.slane %v243_v7, %v242_v63 }
 0x136   :  { %v258_v12 = vrot.slane %v244_v9, %v242_v63  ;;  %v259_v13 = vcombine.high %v251_v10, %v251_v10  ;;  %v263_v14 = vrot.slane %v251_v10, %v262_v8 }
 0x138   :  { %v267_v15 = vrot.slane %v258_v12, %v262_v8  ;;  %v271_v16 = vrot.slane %v259_v13, %v262_v8  ;;  %v275_v18 = vmul.f32 %v263_v14, %v469_v25  ;;  %v276_v22 = vmul.f32 %v263_v14, %v454_v19 }
 0x139   :  { %v277_v23 = vmul.f32 %v263_v14, %v487_v35  ;;  %v278_v24 = vmul.f32 %v263_v14, %v504_v41 }
 0x13a   :  { %v279_v27 = vmul.f32 %v267_v15, %v474_v26  ;;  %v280_v28 = vmul.f32 %v267_v15, %v459_v20  ;;  %v281_v30 = vmul.f32 %v267_v15, %v492_v36  ;;  %v282_v31 = vmul.f32 %v267_v15, %v509_v42 }
 0x13b   :  { %v283_v32 = vmul.f32 %v271_v16, %v479_v29  ;;  %v284_v33 = vmul.f32 %v271_v16, %v464_v21  ;;  %v285_v25 = vmul.f32 %v271_v16, %v499_v40  ;;  %v286_v19 = vmul.f32 %v271_v16, %v515_v44 }
 0x13c   :  { %v287_v34 = vadd.f32 %v279_v27, %v275_v18  ;;  %v289_v35 = vadd.f32 %v280_v28, %v276_v22  ;;  %v291_v37 = vadd.f32 %v281_v30, %v277_v23  ;;  %v293_v41 = vadd.f32 %v282_v31, %v278_v24 }
 0x13e   :  { %v288_v26 = vadd.f32 %v287_v34, %v283_v32  ;;  %v290_v38 = vadd.f32 %v289_v35, %v284_v33  ;;  %v292_v20 = vadd.f32 %v291_v37, %v285_v25  ;;  %v294_v39 = vadd.f32 %v293_v41, %v286_v19 }
 0x140   :  { %v305_v36 = vsel %vm302_vm5, %v288_v26, 0.0  ;;  %v306_v43 = vsel %vm302_vm5, %v290_v38, 0.0  ;;  %v307_v42 = vsel %vm302_vm5, %v292_v20, 0.0  ;;  %v308_v45 = vsel %vm302_vm5, %v294_v39, 0.0 }
 0x141   :  { %v309_v29 = vadd.f32 %v305_v36, %v402_v0  ;;  %v310_v21 = vadd.f32 %v306_v43, %v407_v1  ;;  %v311_v40 = vadd.f32 %v307_v42, %v412_v2  ;;  %v312_v44 = vadd.f32 %v308_v45, %v419_v5 }
 0x143   :  { %313 = vst [vmem:[%s562_s5] sm:$0xff] %v309_v29  ;;  %314 = vst [vmem:[%s562_s5 + $0x8] sm:$0xff] %v310_v21 }
 0x144   :  { %315 = vst [vmem:[%s562_s5 + $0x10] sm:$0xff] %v311_v40  ;;  %316 = vst [vmem:[%s562_s5 + $0x18] sm:$0xff] %v312_v44 }

</bundles_post_ra>
